<compile_context>
chip_gen: v7x
topology: tpu7x:2x2x1
jax: 0.10.0
libtpu: 0.0.40
codegen_flags: <defaults>
</compile_context>

<pallas_src>
import jax
import jax.numpy as jnp
from jax.experimental import pallas as pl
from jax.experimental.pallas import tpu as pltpu

_H1, _H2 = 512, 128


# ---------------------------------------------------------------------------
# Kernel
# ---------------------------------------------------------------------------
def _triggernet_kernel(x_ref, w1_ref, b1_ref, w2_ref, b2_ref, w3_ref, b3_ref, o_ref):
    cdt = w1_ref.dtype                              # matmul compute dtype (bf16 default / f32)
    x = x_ref[...].astype(cdt)                      # (bm, D) natural layout, batch on sublanes

    # Linear(D, 512), computed transposed: h1[f, b] = sum_d W1[f, d] * x[b, d].
    # Contracting the last dims of both operands avoids any explicit transpose
    # of the x tile; the result has batch on the lane dimension.
    h1 = jax.lax.dot_general(
        w1_ref[...], x,
        dimension_numbers=(((1,), (1,)), ((), ())),
        preferred_element_type=jnp.float32)                       # (512, bm) f32 acc
    # Bias + ReLU on the f32 MXU result, then ONE cast to the matmul dtype so
    # the f32 copy is dead before the second dot (halves spill traffic @ bf16).
    h1 = jnp.maximum(h1 + b1_ref[...], 0.0).astype(cdt)           # (512, bm)

    # Dropout(0.3): identity at inference time.
    # TODO(synk): training-mode dropout (pltpu.prng_seed + prng_random_bits mask
    #             + 1/(1-p) scale) not implemented.

    # Linear(512, 128) + ReLU
    h2 = jnp.dot(w2_ref[...], h1, preferred_element_type=jnp.float32)   # (128, bm)
    h2 = jnp.maximum(h2 + b2_ref[...], 0.0)                             # f32

    # Linear(128, 1): VPU broadcast-multiply + sublane reduction -> lane-dense row.
    logit = jnp.sum(w3_ref[...] * h2, axis=0, keepdims=True) + b3_ref[...]   # (1, bm)

    # Numerically stable sigmoid (exp of a non-positive argument only).
    z = jnp.exp(-jnp.abs(logit))
    inv = 1.0 / (1.0 + z)
    sig = jnp.where(logit >= 0.0, inv, z * inv)
    o_ref[...] = sig.astype(o_ref.dtype)


# ---------------------------------------------------------------------------
# Tile-size selection (VMEM-aware, D-aware, v7x dual-TC aware)
# ---------------------------------------------------------------------------
def _vmem_bytes(bm, D, mm_itemsize):
    # Double-buffered f32 x tile + h1 (f32 + matmul dtype) + h2 f32 + out tile,
    # plus resident weights (counted double-buffered, to be safe).
    per_elem = 2 * D * 4 + _H1 * (4 + mm_itemsize) + _H2 * 4 + 2 * 4
    weights = 2 * ((_H1 * D + _H2 * _H1) * mm_itemsize + (_H1 + _H2 + _H2 + 1) * 4)
    return bm * per_elem + weights


def _pick_bm(B, D, mm_itemsize, target_bm=2048, vmem_budget=16 * 2**20):
    if B <= 128:
        return B                                    # single full-extent block
    bm = min(target_bm, (B // 128) * 128)
    # D-aware VMEM clamp (the v5e default scoped limit is the smallest; we also
    # raise vmem_limit_bytes explicitly in the wrapper).
    while bm > 128 and _vmem_bytes(bm, D, mm_itemsize) > vmem_budget:
        bm -= 128
    # Keep >= 2 (balanced) grid steps so dimension_semantics=("parallel",)
    # can shard the batch across v7x's two TensorCores.
    nsteps = max(2, pl.cdiv(B, bm))
    bm = min(bm, max(128, pl.cdiv(pl.cdiv(B, nsteps), 128) * 128))
    return bm


# ---------------------------------------------------------------------------
# Wrapper
# ---------------------------------------------------------------------------
def triggernet_forward(x, params, *, bm=None, matmul_dtype=jnp.bfloat16):
    """x: (B, D) float32.  params: PyTorch-layout weights:
         w1 (512, D), b1 (512, 1), w2 (128, 512), b2 (128, 1), w3 (128, 1), b3 (1, 1).
       Returns sigmoid output of shape (B, 1) float32."""
    B, D = x.shape
    mm_isz = jnp.dtype(matmul_dtype).itemsize

    if bm is None:
        bm = _pick_bm(B, D, mm_isz)
    else:
        bm = int(bm)
        bm = B if B <= 128 else max(128, min((B // 128) * 128, (bm // 128) * 128))

    # Matmul operands in the (bf16 by default) MXU dtype; biases / layer-3
    # weights stay f32 on the elementwise path.
    w1 = params["w1"].astype(matmul_dtype)
    w2 = params["w2"].astype(matmul_dtype)
    b1, b2, w3, b3 = params["b1"], params["b2"], params["w3"], params["b3"]

    grid = (pl.cdiv(B, bm),)
    est = _vmem_bytes(bm, D, mm_isz)
    vmem_limit = int(min(40 * 2**20, max(16 * 2**20, 2 * est)))

    out_row = pl.pallas_call(
        _triggernet_kernel,
        out_shape=jax.ShapeDtypeStruct((1, B), jnp.float32),
        grid_spec=pltpu.PrefetchScalarGridSpec(
            num_scalar_prefetch=0,
            grid=grid,
            in_specs=[
                pl.BlockSpec((bm, D), lambda i: (i, 0)),       # x tile (contiguous DMA)
                pl.BlockSpec((_H1, D), lambda i: (0, 0)),      # w1 (grid-invariant)
                pl.BlockSpec((_H1, 1), lambda i: (0, 0)),      # b1 (column)
                pl.BlockSpec((_H2, _H1), lambda i: (0, 0)),    # w2
                pl.BlockSpec((_H2, 1), lambda i: (0, 0)),      # b2
                pl.BlockSpec((_H2, 1), lambda i: (0, 0)),      # w3 (column, VPU path)
                pl.BlockSpec((1, 1), lambda i: (0, 0)),        # b3
            ],
            out_specs=pl.BlockSpec((1, bm), lambda i: (0, i)),  # lane-dense output row
        ),
        compiler_params=pltpu.CompilerParams(
            dimension_semantics=("parallel",),                  # shard batch tiles across TCs
            vmem_limit_bytes=vmem_limit,
        ),
    )(x, w1, b1, w2, b2, w3, b3)

    return out_row.reshape(B, 1)


# ---------------------------------------------------------------------------
# Init + pure-JAX reference
# ---------------------------------------------------------------------------
def init_params(key, input_size):
    """Deterministic init mirroring nn.Linear defaults; PyTorch (out, in) layout."""
    k1, k2, k3, k4, k5, k6 = jax.random.split(key, 6)

    def linear(kw, kb, fan_in, fan_out):
        bound = 1.0 / jnp.sqrt(fan_in)
        w = jax.random.uniform(kw, (fan_out, fan_in), jnp.float32, -bound, bound)
        b = jax.random.uniform(kb, (fan_out, 1), jnp.float32, -bound, bound)
        return w, b

    w1, b1 = linear(k1, k2, input_size, 512)
    w2, b2 = linear(k3, k4, 512, 128)
    w3, b3 = linear(k5, k6, 128, 1)
    # Store w3 as a (128, 1) column (it is consumed by a VPU mul + sublane reduce).
    return dict(w1=w1, b1=b1, w2=w2, b2=b2, w3=w3.T, b3=b3)


def _reference(x, p):
    h1 = jnp.maximum(x @ p["w1"].T + p["b1"].T, 0.0)
    h2 = jnp.maximum(h1 @ p["w2"].T + p["b2"].T, 0.0)
    return jax.nn.sigmoid(h2 @ p["w3"] + p["b3"].T)


if __name__ == "__main__":
    key = jax.random.PRNGKey(0)
    kx, kx2, kp = jax.random.split(key, 3)

    # Small test consistent with Linear(input_size=32, ...).
    B, D = 8, 32
    x = jax.random.normal(kx, (B, D), dtype=jnp.float32)
    params = init_params(kp, D)
    ref = _reference(x, params)

    # Default (bf16 matmul) path.
    out = jax.block_until_ready(triggernet_forward(x, params))
    assert out.shape == (B, 1)
    assert jnp.allclose(out, ref, atol=1e-2), "bf16 kernel mismatch vs. JAX reference"

    # f32 matmul path (exact parity with the PyTorch module in eval mode).
    out_f32 = jax.block_until_ready(
        triggernet_forward(x, params, matmul_dtype=jnp.float32))
    assert jnp.allclose(out_f32, ref, atol=1e-5, rtol=1e-5), "f32 kernel mismatch vs. JAX reference"

    # Multi-tile grid with a ragged last block (exercises clipped boundary blocks).
    B2 = 300
    x2 = jax.random.normal(kx2, (B2, D), dtype=jnp.float32)
    ref2 = _reference(x2, params)
    out2 = jax.block_until_ready(triggernet_forward(x2, params))
    assert out2.shape == (B2, 1)
    assert jnp.allclose(out2, ref2, atol=1e-2), "ragged-batch kernel mismatch vs. JAX reference"

    print("KERNEL_OK")
</pallas_src>

<mosaic_0001>
module attributes {stable_mosaic.version = 11 : i64} {
  func.func @_triggernet_kernel(%arg0: i32, %arg1: memref<8x32xf32, #tpu.memory_space<vmem>>, %arg2: memref<512x32xbf16, #tpu.memory_space<vmem>>, %arg3: memref<512x1xf32, #tpu.memory_space<vmem>>, %arg4: memref<128x512xbf16, #tpu.memory_space<vmem>>, %arg5: memref<128x1xf32, #tpu.memory_space<vmem>>, %arg6: memref<128x1xf32, #tpu.memory_space<vmem>>, %arg7: memref<1x1xf32, #tpu.memory_space<vmem>>, %arg8: memref<1x8xf32, #tpu.memory_space<vmem>>) attributes {dimension_semantics = [#tpu.dimension_semantics<parallel>], iteration_bounds = array<i64: 1>, scalar_prefetch = 0 : i64, scratch_operands = 0 : i64, tpu.core_type = #tpu.core_type<tc>, window_params = [{transform_indices = @transform_0, window_bounds = array<i64: 8, 32>}, {pipeline_mode = #tpu.pipeline_mode<synchronous>, transform_indices = @transform_1, window_bounds = array<i64: 512, 32>}, {pipeline_mode = #tpu.pipeline_mode<synchronous>, transform_indices = @transform_2, window_bounds = array<i64: 512, 1>}, {pipeline_mode = #tpu.pipeline_mode<synchronous>, transform_indices = @transform_3, window_bounds = array<i64: 128, 512>}, {pipeline_mode = #tpu.pipeline_mode<synchronous>, transform_indices = @transform_4, window_bounds = array<i64: 128, 1>}, {pipeline_mode = #tpu.pipeline_mode<synchronous>, transform_indices = @transform_5, window_bounds = array<i64: 128, 1>}, {pipeline_mode = #tpu.pipeline_mode<synchronous>, transform_indices = @transform_6, window_bounds = array<i64: 1, 1>}, {transform_indices = @transform_7, window_bounds = array<i64: 1, 8>}]} {
    %c0 = arith.constant 0 : index
    %c0_0 = arith.constant 0 : index
    %0 = vector.load %arg1[%c0, %c0_0] : memref<8x32xf32, #tpu.memory_space<vmem>>, vector<8x32xf32>
    %1 = arith.truncf %0 : vector<8x32xf32> to vector<8x32xbf16>
    %c0_1 = arith.constant 0 : index
    %c0_2 = arith.constant 0 : index
    %2 = vector.load %arg2[%c0_1, %c0_2] : memref<512x32xbf16, #tpu.memory_space<vmem>>, vector<512x32xbf16>
    %cst = arith.constant dense<0.000000e+00> : vector<512x8xf32>
    %3 = tpu.matmul %2, %1, %cst {dimension_numbers = #tpu.dot_dimension_numbers<[1], [1], [0], [0], [0, 0, 1, 0], [], []>} : vector<512x32xbf16>, vector<8x32xbf16>, vector<512x8xf32> -> vector<512x8xf32>
    %c0_3 = arith.constant 0 : index
    %c0_4 = arith.constant 0 : index
    %4 = vector.load %arg3[%c0_3, %c0_4] : memref<512x1xf32, #tpu.memory_space<vmem>>, vector<512x1xf32>
    %5 = vector.broadcast %4 : vector<512x1xf32> to vector<512x8xf32>
    %6 = arith.addf %3, %5 : vector<512x8xf32>
    %cst_5 = arith.constant 0.000000e+00 : f32
    %7 = vector.broadcast %cst_5 : f32 to vector<512x8xf32>
    %8 = arith.maximumf %6, %7 : vector<512x8xf32>
    %9 = arith.truncf %8 : vector<512x8xf32> to vector<512x8xbf16>
    %c0_6 = arith.constant 0 : index
    %c0_7 = arith.constant 0 : index
    %10 = vector.load %arg4[%c0_6, %c0_7] : memref<128x512xbf16, #tpu.memory_space<vmem>>, vector<128x512xbf16>
    %cst_8 = arith.constant dense<0.000000e+00> : vector<128x8xf32>
    %11 = tpu.matmul %10, %9, %cst_8 {dimension_numbers = #tpu.dot_dimension_numbers<[1], [0], [0], [1], [0, 0, 1, 1], [], []>} : vector<128x512xbf16>, vector<512x8xbf16>, vector<128x8xf32> -> vector<128x8xf32>
    %c0_9 = arith.constant 0 : index
    %c0_10 = arith.constant 0 : index
    %12 = vector.load %arg5[%c0_9, %c0_10] : memref<128x1xf32, #tpu.memory_space<vmem>>, vector<128x1xf32>
    %13 = vector.broadcast %12 : vector<128x1xf32> to vector<128x8xf32>
    %14 = arith.addf %11, %13 : vector<128x8xf32>
    %cst_11 = arith.constant 0.000000e+00 : f32
    %15 = vector.broadcast %cst_11 : f32 to vector<128x8xf32>
    %16 = arith.maximumf %14, %15 : vector<128x8xf32>
    %c0_12 = arith.constant 0 : index
    %c0_13 = arith.constant 0 : index
    %17 = vector.load %arg6[%c0_12, %c0_13] : memref<128x1xf32, #tpu.memory_space<vmem>>, vector<128x1xf32>
    %18 = vector.broadcast %17 : vector<128x1xf32> to vector<128x8xf32>
    %19 = arith.mulf %18, %16 : vector<128x8xf32>
    %cst_14 = arith.constant dense<0.000000e+00> : vector<8xf32>
    %20 = vector.multi_reduction <add>, %19, %cst_14 [0] : vector<128x8xf32> to vector<8xf32>
    %21 = vector.shape_cast %20 : vector<8xf32> to vector<1x8xf32>
    %c0_15 = arith.constant 0 : index
    %c0_16 = arith.constant 0 : index
    %22 = vector.load %arg7[%c0_15, %c0_16] : memref<1x1xf32, #tpu.memory_space<vmem>>, vector<1x1xf32>
    %23 = vector.broadcast %22 : vector<1x1xf32> to vector<1x8xf32>
    %24 = arith.addf %21, %23 : vector<1x8xf32>
    %25 = math.absf %24 : vector<1x8xf32>
    %cst_17 = arith.constant 0.000000e+00 : f32
    %26 = vector.broadcast %cst_17 : f32 to vector<1x8xf32>
    %27 = arith.subf %26, %25 : vector<1x8xf32>
    %28 = math.exp %27 : vector<1x8xf32>
    %cst_18 = arith.constant 1.000000e+00 : f32
    %29 = vector.broadcast %cst_18 : f32 to vector<1x8xf32>
    %30 = arith.addf %29, %28 : vector<1x8xf32>
    %cst_19 = arith.constant 1.000000e+00 : f32
    %31 = vector.broadcast %cst_19 : f32 to vector<1x8xf32>
    %32 = arith.divf %31, %30 : vector<1x8xf32>
    %cst_20 = arith.constant 0.000000e+00 : f32
    %33 = vector.broadcast %cst_20 : f32 to vector<1x8xf32>
    %34 = arith.cmpf oge, %24, %33 : vector<1x8xf32>
    %35 = arith.mulf %28, %32 : vector<1x8xf32>
    %36 = arith.select %34, %32, %35 : vector<1x8xi1>, vector<1x8xf32>
    %c0_21 = arith.constant 0 : index
    %c0_22 = arith.constant 0 : index
    %37 = vector.load %arg8[%c0_21, %c0_22] : memref<1x8xf32, #tpu.memory_space<vmem>>, vector<1x8xf32>
    tpu.vector_store %arg8[%c0_21, %c0_22], %36 {strides = array<i32>} : memref<1x8xf32, #tpu.memory_space<vmem>>, vector<1x8xf32>,
    return
  }
  func.func @transform_0(%arg0: i32) -> (i32, i32) {
    %c0_i32 = arith.constant 0 : i32
    %c0_i32_0 = arith.constant 0 : i32
    return %arg0, %c0_i32 : i32, i32
  }
  func.func @transform_1(%arg0: i32) -> (i32, i32) {
    %c0_i32 = arith.constant 0 : i32
    %c0_i32_0 = arith.constant 0 : i32
    %c0_i32_1 = arith.constant 0 : i32
    return %c0_i32, %c0_i32_0 : i32, i32
  }
  func.func @transform_2(%arg0: i32) -> (i32, i32) {
    %c0_i32 = arith.constant 0 : i32
    %c0_i32_0 = arith.constant 0 : i32
    %c0_i32_1 = arith.constant 0 : i32
    return %c0_i32, %c0_i32_0 : i32, i32
  }
  func.func @transform_3(%arg0: i32) -> (i32, i32) {
    %c0_i32 = arith.constant 0 : i32
    %c0_i32_0 = arith.constant 0 : i32
    %c0_i32_1 = arith.constant 0 : i32
    return %c0_i32, %c0_i32_0 : i32, i32
  }
  func.func @transform_4(%arg0: i32) -> (i32, i32) {
    %c0_i32 = arith.constant 0 : i32
    %c0_i32_0 = arith.constant 0 : i32
    %c0_i32_1 = arith.constant 0 : i32
    return %c0_i32, %c0_i32_0 : i32, i32
  }
  func.func @transform_5(%arg0: i32) -> (i32, i32) {
    %c0_i32 = arith.constant 0 : i32
    %c0_i32_0 = arith.constant 0 : i32
    %c0_i32_1 = arith.constant 0 : i32
    return %c0_i32, %c0_i32_0 : i32, i32
  }
  func.func @transform_6(%arg0: i32) -> (i32, i32) {
    %c0_i32 = arith.constant 0 : i32
    %c0_i32_0 = arith.constant 0 : i32
    %c0_i32_1 = arith.constant 0 : i32
    return %c0_i32, %c0_i32_0 : i32, i32
  }
  func.func @transform_7(%arg0: i32) -> (i32, i32) {
    %c0_i32 = arith.constant 0 : i32
    %c0_i32_0 = arith.constant 0 : i32
    return %c0_i32, %arg0 : i32, i32
  }
}

</mosaic_0001>

<bundles_post_ra>
// kernel: tpu_custom_call.1
= control target key start
LH: loop header
LB: loop body
LE: loop exit
PB: predicated region body
PF: predicated region fallthrough
CT: control target
= control target key end

     0   :  { %s3112_s0 = inlined_call_operand.vmem [shape: f32[8,32], index: 0, kind: input, shape index: {}]   ;;  %s3113_s1 = inlined_call_operand.vmem [shape: bf16[512,32], index: 1, kind: input, shape index: {}]   ;;  %s3114_s2 = inlined_call_operand.vmem [shape: f32[512,1], index: 2, kind: input, shape index: {}]   ;;  %s3115_s3 = inlined_call_operand.vmem [shape: bf16[128,512], index: 3, kind: input, shape index: {}]   ;;  %s3116_s4 = inlined_call_operand.vmem [shape: f32[128,1], index: 4, kind: input, shape index: {}]   ;;  %s3117_s5 = inlined_call_operand.vmem [shape: f32[128,1], index: 5, kind: input, shape index: {}]   ;;  %s3118_s6 = inlined_call_operand.<no memory space> [shape: f32[1,1], index: 6, kind: input, shape index: {}]   ;;  %s3119_s7 = inlined_call_operand.hbm [shape: f32[1,8], index: 7, kind: output, shape index: {}]  }
   0x1   :  { %v12_v0 = vstv %s3118_s6 }
   0x2   :  { %13 = vst [vmem:[#allocation2] sm:$0x1] %v12_v0 }
   0x3   :  { %v112_v1 = vld [vmem:[%s3114_s2 + $0x80] sm:$0xff]  ;;  %vm640_vm0 = vcmask 261120   ;;  %v2262_v4 = vmov 0   ;;  %v113_v6 = vld [vmem:[%s3114_s2 + $0x88] sm:$0xff]  ;;  %v114_v10 = vld [vmem:[%s3114_s2 + $0x90] sm:$0xff] }
   0x4   :  { %v96_v2 = vld [vmem:[%s3114_s2] sm:$0xff]  ;;  %2153 = vset.pattern.permute.xlu1 %v2262_v4  ;;  %2152 = vset.pattern.permute.xlu0 %v2262_v4  ;;  %v97_v7 = vld [vmem:[%s3114_s2 + $0x8] sm:$0xff]  ;;  %v115_v11 = vld [vmem:[%s3114_s2 + $0x98] sm:$0xff] }
   0x5   :  { %v30_v3 = vld [vmem:[%s3112_s0] sm:$0xff]  ;;  %242 = vperm.xlu0 %2152, %v112_v1   ;;  %162 = vperm.xlu1 %2153, %v96_v2   ;;  %v2155_v12 = vld [vmem:[%s3113_s1 + $0x8] sm:$0xff]   ;;  %v2156_v13 = vld [vmem:[%s3113_s1 + $0x10] sm:$0xff]  }
   0x6   :  { %v31_v5 = vpack.c.bf16 %v30_v3, %v30_v3  ;;  %v2154_v9 = vld [vmem:[%s3113_s1] sm:$0xff]   ;;  %v98_v14 = vld [vmem:[%s3114_s2 + $0x10] sm:$0xff]  ;;  %v99_v15 = vld [vmem:[%s3114_s2 + $0x18] sm:$0xff] }
   0x7   :  { %2069 = vmatprep.mubr.msk.bf16.mxu0 %vm640_vm0, %v2154_v9  ;;  %v116_v16 = vld [vmem:[%s3114_s2 + $0xa0] sm:$0xff]  ;;  %v117_v17 = vld [vmem:[%s3114_s2 + $0xa8] sm:$0xff]  ;;  %v2157_v18 = vld [vmem:[%s3113_s1 + $0x18] sm:$0xff]  }
   0x8   :  { %2149 = vmatprep.subr.msk.bf16.mxu0 %vm640_vm0, %v31_v5  ;;  %v738_v8 = vsel %vm640_vm0, %v31_v5, 0  ;;  %v2158_v19 = vld [vmem:[%s3113_s1 + $0x20] sm:$0xff]   ;;  %v101_v21 = vld [vmem:[%s3114_s2 + $0x28] sm:$0xff]  ;;  %v118_v22 = vld [vmem:[%s3114_s2 + $0xb0] sm:$0xff] }
   0x9   :  { %2068 = vmatpush3.bf16.xpose.msra.mxu0 %v738_v8  ;;  %247 = vperm.xlu0 %2152, %v113_v6   ;;  %v100_v20 = vld [vmem:[%s3114_s2 + $0x20] sm:$0xff]  ;;  %v119_v23 = vld [vmem:[%s3114_s2 + $0xb8] sm:$0xff]  ;;  %v2159_v24 = vld [vmem:[%s3113_s1 + $0x28] sm:$0xff]  }
   0xa   :  { %167 = vperm.xlu1 %2153, %v97_v7   ;;  %v2160_v25 = vld [vmem:[%s3113_s1 + $0x30] sm:$0xff]   ;;  %v103_v27 = vld [vmem:[%s3114_s2 + $0x38] sm:$0xff]  ;;  %v120_v28 = vld [vmem:[%s3114_s2 + $0xc0] sm:$0xff] }
   0xb   :  { %v102_v26 = vld [vmem:[%s3114_s2 + $0x30] sm:$0xff]  ;;  %v121_v29 = vld [vmem:[%s3114_s2 + $0xc8] sm:$0xff]  ;;  %v2161_v30 = vld [vmem:[%s3113_s1 + $0x38] sm:$0xff]  }
   0xc   :  { %v2162_v31 = vld [vmem:[%s3113_s1 + $0x40] sm:$0xff]   ;;  %v105_v33 = vld [vmem:[%s3114_s2 + $0x48] sm:$0xff]  ;;  %v122_v34 = vld [vmem:[%s3114_s2 + $0xd0] sm:$0xff] }
   0xd   :  { %252 = vperm.xlu0 %2152, %v114_v10   ;;  %v104_v32 = vld [vmem:[%s3114_s2 + $0x40] sm:$0xff]  ;;  %v123_v35 = vld [vmem:[%s3114_s2 + $0xd8] sm:$0xff]  ;;  %v2163_v36 = vld [vmem:[%s3113_s1 + $0x48] sm:$0xff]  }
   0xe   :  { %257 = vperm.xlu1 %2153, %v115_v11   ;;  %v2164_v37 = vld [vmem:[%s3113_s1 + $0x50] sm:$0xff]   ;;  %v107_v39 = vld [vmem:[%s3114_s2 + $0x58] sm:$0xff]  ;;  %v124_v40 = vld [vmem:[%s3114_s2 + $0xe0] sm:$0xff] }
   0xf   :  { %v106_v38 = vld [vmem:[%s3114_s2 + $0x50] sm:$0xff]  ;;  %v125_v41 = vld [vmem:[%s3114_s2 + $0xe8] sm:$0xff]  ;;  %v2165_v42 = vld [vmem:[%s3113_s1 + $0x58] sm:$0xff]  }
  0x10   :  { %2070 = vmatmul.mubr.msk.bf16.vlgmr.msra.gmra.mrb[0].mxu0 %vm640_vm0, %v2155_v12  ;;  %v2166_v43 = vld [vmem:[%s3113_s1 + $0x60] sm:$0xff]   ;;  %v109_v45 = vld [vmem:[%s3114_s2 + $0x68] sm:$0xff]  ;;  %v126_v46 = vld [vmem:[%s3114_s2 + $0xf0] sm:$0xff] }
  0x11   :  { %2073 = vmatprep.mubr.msk.bf16.mxu0 %vm640_vm0, %v2156_v13  ;;  %172 = vperm.xlu0 %2152, %v98_v14   ;;  %v108_v44 = vld [vmem:[%s3114_s2 + $0x60] sm:$0xff]  ;;  %v127_v47 = vld [vmem:[%s3114_s2 + $0xf8] sm:$0xff]  ;;  %v2167_v48 = vld [vmem:[%s3113_s1 + $0x68] sm:$0xff]  }
  0x12   :  { %177 = vperm.xlu1 %2153, %v99_v15   ;;  %v2168_v49 = vld [vmem:[%s3113_s1 + $0x70] sm:$0xff]   ;;  %v111_v51 = vld [vmem:[%s3114_s2 + $0x78] sm:$0xff]  ;;  %v144_v52 = vld [vmem:[%s3114_s2 + $0x180] sm:$0xff] }
  0x13   :  { %v110_v50 = vld [vmem:[%s3114_s2 + $0x70] sm:$0xff]  ;;  %v145_v53 = vld [vmem:[%s3114_s2 + $0x188] sm:$0xff]  ;;  %v2169_v54 = vld [vmem:[%s3113_s1 + $0x78] sm:$0xff]  }
  0x14   :  { %v2170_v55 = vld [vmem:[%s3113_s1 + $0x80] sm:$0xff]   ;;  %v129_v57 = vld [vmem:[%s3114_s2 + $0x108] sm:$0xff]  ;;  %v146_v58 = vld [vmem:[%s3114_s2 + $0x190] sm:$0xff] }
  0x15   :  { %262 = vperm.xlu0 %2152, %v116_v16   ;;  %v128_v56 = vld [vmem:[%s3114_s2 + $0x100] sm:$0xff]  ;;  %v147_v59 = vld [vmem:[%s3114_s2 + $0x198] sm:$0xff]  ;;  %v2171_v60 = vld [vmem:[%s3113_s1 + $0x88] sm:$0xff]  }
  0x16   :  { %267 = vperm.xlu1 %2153, %v117_v17   ;;  %v2172_v61 = vld [vmem:[%s3113_s1 + $0x90] sm:$0xff]   ;;  %v131_v63 = vld [vmem:[%s3114_s2 + $0x118] sm:$0xff] }
  0x17   :  { %v130_v62 = vld [vmem:[%s3114_s2 + $0x110] sm:$0xff] }
  0x18   :  { %2074 = vmatmul.mubr.msk.bf16.gmra.mrb[4].mxu0 %vm640_vm0, %v2157_v18 }
  0x19   :  { %2077 = vmatprep.mubr.msk.bf16.mxu0 %vm640_vm0, %v2158_v19  ;;  %182 = vperm.xlu0 %2152, %v100_v20  }
  0x1a   :  { %187 = vperm.xlu1 %2153, %v101_v21  }
  0x1d   :  { %272 = vperm.xlu0 %2152, %v118_v22  }
  0x1e   :  { %277 = vperm.xlu1 %2153, %v119_v23  }
  0x20   :  { %2078 = vmatmul.mubr.msk.bf16.gmra.mrb[8].mxu0 %vm640_vm0, %v2159_v24 }
  0x21   :  { %2081 = vmatprep.mubr.msk.bf16.mxu0 %vm640_vm0, %v2160_v25  ;;  %192 = vperm.xlu0 %2152, %v102_v26  }
  0x22   :  { %197 = vperm.xlu1 %2153, %v103_v27  }
  0x25   :  { %282 = vperm.xlu0 %2152, %v120_v28  }
  0x26   :  { %287 = vperm.xlu1 %2153, %v121_v29  }
  0x28   :  { %2082 = vmatmul.mubr.msk.bf16.gmra.mrb[12].mxu0 %vm640_vm0, %v2161_v30 }
  0x29   :  { %2085 = vmatprep.mubr.msk.bf16.mxu0 %vm640_vm0, %v2162_v31  ;;  %202 = vperm.xlu0 %2152, %v104_v32  }
  0x2a   :  { %207 = vperm.xlu1 %2153, %v105_v33  }
  0x2d   :  { %292 = vperm.xlu0 %2152, %v122_v34  }
  0x2e   :  { %297 = vperm.xlu1 %2153, %v123_v35  }
  0x30   :  { %2086 = vmatmul.mubr.msk.bf16.gmra.mrb[16].mxu0 %vm640_vm0, %v2163_v36 }
  0x31   :  { %2089 = vmatprep.mubr.msk.bf16.mxu0 %vm640_vm0, %v2164_v37  ;;  %212 = vperm.xlu0 %2152, %v106_v38  }
  0x32   :  { %217 = vperm.xlu1 %2153, %v107_v39  }
  0x35   :  { %302 = vperm.xlu0 %2152, %v124_v40  }
  0x36   :  { %307 = vperm.xlu1 %2153, %v125_v41  }
  0x38   :  { %2090 = vmatmul.mubr.msk.bf16.gmra.mrb[20].mxu0 %vm640_vm0, %v2165_v42 }
  0x39   :  { %2093 = vmatprep.mubr.msk.bf16.mxu0 %vm640_vm0, %v2166_v43  ;;  %222 = vperm.xlu0 %2152, %v108_v44  }
  0x3a   :  { %227 = vperm.xlu1 %2153, %v109_v45  }
  0x3d   :  { %312 = vperm.xlu0 %2152, %v126_v46  }
  0x3e   :  { %317 = vperm.xlu1 %2153, %v127_v47  }
  0x40   :  { %2094 = vmatmul.mubr.msk.bf16.gmra.mrb[24].mxu0 %vm640_vm0, %v2167_v48 }
  0x41   :  { %2097 = vmatprep.mubr.msk.bf16.mxu0 %vm640_vm0, %v2168_v49  ;;  %232 = vperm.xlu0 %2152, %v110_v50  }
  0x42   :  { %237 = vperm.xlu1 %2153, %v111_v51  }
  0x45   :  { %402 = vperm.xlu0 %2152, %v144_v52  }
  0x46   :  { %407 = vperm.xlu1 %2153, %v145_v53  }
  0x48   :  { %2098 = vmatmul.mubr.msk.bf16.gmra.mrb[28].mxu0 %vm640_vm0, %v2169_v54 }
  0x49   :  { %2101 = vmatprep.mubr.msk.bf16.mxu0 %vm640_vm0, %v2170_v55  ;;  %322 = vperm.xlu0 %2152, %v128_v56  }
  0x4a   :  { %327 = vperm.xlu1 %2153, %v129_v57  }
  0x4d   :  { %412 = vperm.xlu0 %2152, %v146_v58  }
  0x4e   :  { %417 = vperm.xlu1 %2153, %v147_v59  }
  0x50   :  { %2102 = vmatmul.mubr.msk.bf16.gmra.mrb[32].mxu0 %vm640_vm0, %v2171_v60 }
  0x51   :  { %14 = vsyncpa [#allocation4], 0  ;;  %2105 = vmatprep.mubr.msk.bf16.mxu0 %vm640_vm0, %v2172_v61  ;;  %332 = vperm.xlu0 %2152, %v130_v62   ;;  %v148_v0 = vld [vmem:[%s3114_s2 + $0x1a0] sm:$0xff]  ;;  %v149_v1 = vld [vmem:[%s3114_s2 + $0x1a8] sm:$0xff]  ;;  %vm1735_vm1 = vcmask 64512   ;;  %vm1794_vm2 = vcmask 57344  }
  0x52   :  { %337 = vperm.xlu1 %2153, %v131_v63   ;;  %v2173_v2 = vld [vmem:[%s3113_s1 + $0x98] sm:$0xff]   ;;  %v2174_v3 = vld [vmem:[%s3113_s1 + $0xa0] sm:$0xff]   ;;  %v133_v5 = vld [vmem:[%s3114_s2 + $0x128] sm:$0xff] }
  0x53   :  { %v132_v4 = vld [vmem:[%s3114_s2 + $0x120] sm:$0xff]  ;;  %v150_v6 = vld [vmem:[%s3114_s2 + $0x1b0] sm:$0xff]  ;;  %v151_v7 = vld [vmem:[%s3114_s2 + $0x1b8] sm:$0xff] }
  0x54   :  { %v2175_v8 = vld [vmem:[%s3113_s1 + $0xa8] sm:$0xff]   ;;  %v2176_v9 = vld [vmem:[%s3113_s1 + $0xb0] sm:$0xff]   ;;  %v135_v11 = vld [vmem:[%s3114_s2 + $0x138] sm:$0xff] }
  0x55   :  { %422 = vperm.xlu0 %2152, %v148_v0   ;;  %v134_v10 = vld [vmem:[%s3114_s2 + $0x130] sm:$0xff]  ;;  %v152_v12 = vld [vmem:[%s3114_s2 + $0x1c0] sm:$0xff]  ;;  %v153_v13 = vld [vmem:[%s3114_s2 + $0x1c8] sm:$0xff] }
  0x56   :  { %427 = vperm.xlu1 %2153, %v149_v1   ;;  %v2177_v14 = vld [vmem:[%s3113_s1 + $0xb8] sm:$0xff]   ;;  %v2178_v15 = vld [vmem:[%s3113_s1 + $0xc0] sm:$0xff]   ;;  %v137_v17 = vld [vmem:[%s3114_s2 + $0x148] sm:$0xff] }
  0x57   :  { %v136_v16 = vld [vmem:[%s3114_s2 + $0x140] sm:$0xff]  ;;  %v154_v18 = vld [vmem:[%s3114_s2 + $0x1d0] sm:$0xff]  ;;  %v155_v19 = vld [vmem:[%s3114_s2 + $0x1d8] sm:$0xff] }
  0x58   :  { %2106 = vmatmul.mubr.msk.bf16.gmra.mrb[36].mxu0 %vm640_vm0, %v2173_v2  ;;  %v2179_v20 = vld [vmem:[%s3113_s1 + $0xc8] sm:$0xff]   ;;  %v2180_v21 = vld [vmem:[%s3113_s1 + $0xd0] sm:$0xff]   ;;  %v139_v23 = vld [vmem:[%s3114_s2 + $0x158] sm:$0xff] }
  0x59   :  { %2109 = vmatprep.mubr.msk.bf16.mxu0 %vm640_vm0, %v2174_v3  ;;  %342 = vperm.xlu0 %2152, %v132_v4   ;;  %v138_v22 = vld [vmem:[%s3114_s2 + $0x150] sm:$0xff]  ;;  %v156_v24 = vld [vmem:[%s3114_s2 + $0x1e0] sm:$0xff]  ;;  %v157_v25 = vld [vmem:[%s3114_s2 + $0x1e8] sm:$0xff] }
  0x5a   :  { %347 = vperm.xlu1 %2153, %v133_v5   ;;  %v2181_v26 = vld [vmem:[%s3113_s1 + $0xd8] sm:$0xff]   ;;  %v2182_v27 = vld [vmem:[%s3113_s1 + $0xe0] sm:$0xff]   ;;  %v141_v29 = vld [vmem:[%s3114_s2 + $0x168] sm:$0xff] }
  0x5b   :  { %v140_v28 = vld [vmem:[%s3114_s2 + $0x160] sm:$0xff]  ;;  %v158_v30 = vld [vmem:[%s3114_s2 + $0x1f0] sm:$0xff]  ;;  %v159_v31 = vld [vmem:[%s3114_s2 + $0x1f8] sm:$0xff] }
  0x5c   :  { %v2183_v32 = vld [vmem:[%s3113_s1 + $0xe8] sm:$0xff]   ;;  %v2184_v33 = vld [vmem:[%s3113_s1 + $0xf0] sm:$0xff]   ;;  %v143_v35 = vld [vmem:[%s3114_s2 + $0x178] sm:$0xff] }
  0x5d   :  { %432 = vperm.xlu0 %2152, %v150_v6   ;;  %v142_v34 = vld [vmem:[%s3114_s2 + $0x170] sm:$0xff]  ;;  %v1157_v36 = vld [vmem:[%s3116_s4] sm:$0xff]  ;;  %v1158_v37 = vld [vmem:[%s3116_s4 + $0x8] sm:$0xff] }
  0x5e   :  { %437 = vperm.xlu1 %2153, %v151_v7   ;;  %v2185_v38 = vld [vmem:[%s3113_s1 + $0xf8] sm:$0xff]   ;;  %v1159_v41 = vld [vmem:[%s3116_s4 + $0x10] sm:$0xff]  ;;  %v1161_v45 = vld [vmem:[%s3116_s4 + $0x20] sm:$0xff] }
  0x5f   :  { %v1160_v42 = vld [vmem:[%s3116_s4 + $0x18] sm:$0xff]  ;;  %v1623_v46 = vld [vmem:[%s3117_s5] sm:$0xff]  ;;  %v1624_v49 = vld [vmem:[%s3117_s5 + $0x8] sm:$0xff] }
  0x60   :  { %2110 = vmatmul.mubr.msk.bf16.gmra.mrb[40].mxu0 %vm640_vm0, %v2175_v8  ;;  %v1162_v50 = vld [vmem:[%s3116_s4 + $0x28] sm:$0xff]  ;;  %v1625_v52 = vld [vmem:[%s3117_s5 + $0x10] sm:$0xff]  ;;  %v1626_v55 = vld [vmem:[%s3117_s5 + $0x18] sm:$0xff] }
  0x61   :  { %2113 = vmatprep.mubr.msk.bf16.mxu0 %vm640_vm0, %v2176_v9  ;;  %352 = vperm.xlu0 %2152, %v134_v10   ;;  %v1163_v53 = vld [vmem:[%s3116_s4 + $0x30] sm:$0xff]  ;;  %v1164_v56 = vld [vmem:[%s3116_s4 + $0x38] sm:$0xff]  ;;  %v1627_v59 = vld [vmem:[%s3117_s5 + $0x20] sm:$0xff] }
  0x62   :  { %357 = vperm.xlu1 %2153, %v135_v11   ;;  %v1165_v60 = vld [vmem:[%s3116_s4 + $0x40] sm:$0xff]  ;;  %v1628_v62 = vld [vmem:[%s3117_s5 + $0x28] sm:$0xff]  ;;  %v1629_v1 = vld [vmem:[%s3117_s5 + $0x30] sm:$0xff] }
  0x63   :  { %v1166_v63 = vld [vmem:[%s3116_s4 + $0x48] sm:$0xff]  ;;  %v1167_v2 = vld [vmem:[%s3116_s4 + $0x50] sm:$0xff]  ;;  %v1630_v5 = vld [vmem:[%s3117_s5 + $0x38] sm:$0xff] }
  0x64   :  { %v1168_v6 = vld [vmem:[%s3116_s4 + $0x58] sm:$0xff]  ;;  %v2188_v8 = vld [vmem:[%s3115_s3 + $0x4] ss:$16 sps:$4 sm:$0xff]  }
  0x65   :  { %442 = vperm.xlu0 %2152, %v152_v12   ;;  %v2191_v9 = vld [vmem:[%s3115_s3 + $0x24] ss:$16 sps:$4 sm:$0xff]  }
  0x66   :  { %447 = vperm.xlu1 %2153, %v153_v13   ;;  %v1631_v10 = vld [vmem:[%s3117_s5 + $0x40] sm:$0xff]  ;;  %1453 = vmatprep.mubr.bf16.mxu1 %v2191_v9  ;;  %v1632_v13 = vld [vmem:[%s3117_s5 + $0x48] sm:$0xff] }
  0x67   :  { %v1169_v11 = vld [vmem:[%s3116_s4 + $0x60] sm:$0xff] }
  0x68   :  { %2114 = vmatmul.mubr.msk.bf16.gmra.mrb[44].mxu0 %vm640_vm0, %v2177_v14  ;;  %v1170_v14 = vld [vmem:[%s3116_s4 + $0x68] sm:$0xff] }
  0x69   :  { %2117 = vmatprep.mubr.msk.bf16.mxu0 %vm640_vm0, %v2178_v15  ;;  %362 = vperm.xlu0 %2152, %v136_v16  }
  0x6a   :  { %367 = vperm.xlu1 %2153, %v137_v17   ;;  %v1633_v17 = vld [vmem:[%s3117_s5 + $0x50] sm:$0xff] }
  0x6d   :  { %452 = vperm.xlu0 %2152, %v154_v18   ;;  %v1171_v18 = vld [vmem:[%s3116_s4 + $0x70] sm:$0xff] }
  0x6e   :  { %457 = vperm.xlu1 %2153, %v155_v19  }
  0x70   :  { %2118 = vmatmul.mubr.msk.bf16.gmra.mrb[48].mxu0 %vm640_vm0, %v2179_v20  ;;  %v1634_v20 = vld [vmem:[%s3117_s5 + $0x58] sm:$0xff] }
  0x71   :  { %2121 = vmatprep.mubr.msk.bf16.mxu0 %vm640_vm0, %v2180_v21  ;;  %372 = vperm.xlu0 %2152, %v138_v22   ;;  %v1172_v21 = vld [vmem:[%s3116_s4 + $0x78] sm:$0xff] }
  0x72   :  { %377 = vperm.xlu1 %2153, %v139_v23   ;;  %v1635_v23 = vld [vmem:[%s3117_s5 + $0x60] sm:$0xff] }
  0x75   :  { %462 = vperm.xlu0 %2152, %v156_v24   ;;  %v1636_v24 = vld [vmem:[%s3117_s5 + $0x68] sm:$0xff] }
  0x76   :  { %467 = vperm.xlu1 %2153, %v157_v25  }
  0x78   :  { %2122 = vmatmul.mubr.msk.bf16.gmra.mrb[52].mxu0 %vm640_vm0, %v2181_v26 }
  0x79   :  { %2125 = vmatprep.mubr.msk.bf16.mxu0 %vm640_vm0, %v2182_v27  ;;  %382 = vperm.xlu0 %2152, %v140_v28   ;;  %v1637_v27 = vld [vmem:[%s3117_s5 + $0x70] sm:$0xff]  ;;  %v1638_v28 = vld [vmem:[%s3117_s5 + $0x78] sm:$0xff] }
  0x7a   :  { %387 = vperm.xlu1 %2153, %v141_v29  }
  0x7d   :  { %472 = vperm.xlu0 %2152, %v158_v30   ;;  %v1773_v30 = vld [vmem:[#allocation2] sm:$0x1] }
  0x7e   :  { %477 = vperm.xlu1 %2153, %v159_v31  }
  0x80   :  { %2126 = vmatmul.mubr.msk.bf16.gmra.mrb[56].mxu0 %vm640_vm0, %v2183_v32 }
  0x81   :  { %2129 = vmatprep.mubr.msk.bf16.mxu0 %vm640_vm0, %v2184_v33  ;;  %392 = vperm.xlu0 %2152, %v142_v34  }
  0x82   :  { %397 = vperm.xlu1 %2153, %v143_v35  }
  0x84   :  { %v2637_v39 = vpop.permute.xlu0 %242  ;;  %v2639_v40 = vpop.permute.xlu1 %162 }
  0x85   :  { %1175 = vperm.xlu0 %2152, %v1157_v36  }
  0x86   :  { %1180 = vperm.xlu1 %2153, %v1158_v37  }
  0x88   :  { %2130 = vmatmul.mubr.msk.bf16.gmra.mrb[60].mxu0 %vm640_vm0, %v2185_v38  ;;  %v2648_v43 = vpop.permute.xlu0 %247 }
  0x89   :  { %v2650_v44 = vpop.permute.xlu1 %167  ;;  %1185 = vperm.xlu0 %2152, %v1159_v41   ;;  %1445 = vmatprep.mubr.bf16.mxu0 %v2188_v8 }
  0x8a   :  { %1190 = vperm.xlu1 %2153, %v1160_v42  }
  0x8c   :  { %v2658_v47 = vpop.permute.xlu0 %252 }
  0x8d   :  { %v2660_v48 = vpop.permute.xlu1 %257  ;;  %1195 = vperm.xlu0 %2152, %v1161_v45  }
  0x8e   :  { %1641 = vperm.xlu1 %2153, %v1623_v46  }
  0x90   :  { %v2668_v51 = vpop.permute.xlu0 %172 }
  0x91   :  { %1646 = vperm.xlu0 %2152, %v1624_v49   ;;  %v2676_v54 = vpop.permute.xlu1 %177 }
  0x92   :  { %1200 = vperm.xlu1 %2153, %v1162_v50  }
  0x94   :  { %v2684_v57 = vpop.permute.xlu0 %262 }
  0x95   :  { %1651 = vperm.xlu0 %2152, %v1625_v52   ;;  %v2686_v58 = vpop.permute.xlu1 %267 }
  0x96   :  { %1205 = vperm.xlu1 %2153, %v1163_v53  }
  0x98   :  { %v2694_v61 = vpop.permute.xlu0 %182 }
  0x99   :  { %1656 = vperm.xlu0 %2152, %v1626_v55   ;;  %v2702_v0 = vpop.permute.xlu1 %187 }
  0x9a   :  { %1210 = vperm.xlu1 %2153, %v1164_v56  }
  0x9c   :  { %v2710_v3 = vpop.permute.xlu0 %272 }
  0x9d   :  { %1661 = vperm.xlu0 %2152, %v1627_v59   ;;  %v2712_v4 = vpop.permute.xlu1 %277 }
  0x9e   :  { %1215 = vperm.xlu1 %2153, %v1165_v60  }
  0xa0   :  { %v2720_v7 = vpop.permute.xlu0 %192 }
  0xa1   :  { %1666 = vperm.xlu0 %2152, %v1628_v62   ;;  %v2734_v12 = vpop.permute.xlu1 %197 }
  0xa2   :  { %1220 = vperm.xlu1 %2153, %v1166_v63  }
  0xa4   :  { %v2742_v15 = vpop.permute.xlu0 %282 }
  0xa5   :  { %1671 = vperm.xlu0 %2152, %v1629_v1   ;;  %v2744_v16 = vpop.permute.xlu1 %287 }
  0xa6   :  { %1225 = vperm.xlu1 %2153, %v1167_v2  }
  0xa8   :  { %v2752_v19 = vpop.permute.xlu0 %202 }
  0xa9   :  { %1676 = vperm.xlu0 %2152, %v1630_v5   ;;  %v2760_v22 = vpop.permute.xlu1 %207 }
  0xaa   :  { %1230 = vperm.xlu1 %2153, %v1168_v6  }
  0xac   :  { %v2768_v25 = vpop.permute.xlu0 %292 }
  0xad   :  { %1681 = vperm.xlu0 %2152, %v1631_v10   ;;  %v2770_v26 = vpop.permute.xlu1 %297 }
  0xae   :  { %1235 = vperm.xlu1 %2153, %v1169_v11  }
  0xb0   :  { %v213_v29 = vpop.permute.xlu0 %212 }
  0xb1   :  { %1686 = vperm.xlu0 %2152, %v1632_v13   ;;  %v218_v31 = vpop.permute.xlu1 %217 }
  0xb2   :  { %1240 = vperm.xlu1 %2153, %v1170_v14  }
  0xb4   :  { %v2778_v32 = vpop.permute.xlu0 %302 }
  0xb5   :  { %1691 = vperm.xlu0 %2152, %v1633_v17   ;;  %v2780_v33 = vpop.permute.xlu1 %307 }
  0xb6   :  { %1245 = vperm.xlu1 %2153, %v1171_v18  }
  0xb8   :  { %v223_v34 = vpop.permute.xlu0 %222 }
  0xb9   :  { %1696 = vperm.xlu0 %2152, %v1634_v20   ;;  %v2782_v35 = vpop.permute.xlu1 %227 }
  0xba   :  { %1250 = vperm.xlu1 %2153, %v1172_v21  }
  0xbc   :  { %v2784_v36 = vpop.permute.xlu0 %312 }
  0xbd   :  { %1701 = vperm.xlu0 %2152, %v1635_v23   ;;  %v2786_v37 = vpop.permute.xlu1 %317 }
  0xbe   :  { %1706 = vperm.xlu1 %2153, %v1636_v24  }
  0xc0   :  { %v233_v38 = vpop.permute.xlu0 %232 }
  0xc1   :  { %1711 = vperm.xlu0 %2152, %v1637_v27   ;;  %v238_v41 = vpop.permute.xlu1 %237 }
  0xc2   :  { %1716 = vperm.xlu1 %2153, %v1638_v28  }
  0xc4   :  { %v2788_v42 = vpop.permute.xlu0 %402 }
  0xc5   :  { %1776 = vperm.xlu0 %2152, %v1773_v30   ;;  %v2790_v45 = vpop.permute.xlu1 %407 }
  0xc8   :  { %v2795_v56 = vpop.permute.xlu0 %322 }
  0xc9   :  { %v2798_v1 = vpop.permute.xlu1 %327 }
  0xe3   :  { %v2071_v46 = vpop.f32.mrb[0].mxu0 }
  0xe4   :  { %v783_v49 = vadd.f32 %v2071_v46, %v2668_v51  ;;  %v774_v50 = vpop.f32.mrb[1].mxu0 }
  0xe5   :  { %v2072_v52 = vpop.f32.mrb[2].mxu0  ;;  %v775_v53 = vadd.f32 %v774_v50, %v2639_v40 }
  0xe6   :  { %v786_v55 = vadd.f32 %v2072_v52, %v2676_v54  ;;  %v777_v59 = vpop.f32.mrb[3].mxu0  ;;  %v1031_v60 = vmax.f32 %v783_v49, 0.0  ;;  %v2805_v54 = vpop.permute.xlu0 %412 }
  0xe7   :  { %v778_v63 = vadd.f32 %v777_v59, %v2650_v44  ;;  %v1029_v2 = vmax.f32 %v775_v53, 0.0  ;;  %v2809_v44 = vpop.permute.xlu1 %417 }
  0xe8   :  { %v1032_v62 = vmax.f32 %v786_v55, 0.0 }
  0xe9   :  { %v1030_v6 = vmax.f32 %v778_v63, 0.0 }
  0xea   :  { %v2800_v5 = vpack.c.bf16 %v1032_v62, %v1031_v60 }
  0xeb   :  { %v2075_v51 = vpop.f32.mrb[4].mxu0  ;;  %v2802_v8 = vpack.c.bf16 %v1030_v6, %v1029_v2  ;;  %v2818_v46 = vpop.permute.xlu1 %337 }
  0xec   :  { %v799_v40 = vadd.f32 %v2075_v51, %v2720_v7  ;;  %v790_v9 = vpop.f32.mrb[5].mxu0  ;;  %v2814_v7 = vpop.permute.xlu0 %332 }
  0xed   :  { %v2076_v10 = vpop.f32.mrb[6].mxu0  ;;  %v791_v11 = vadd.f32 %v790_v9, %v2694_v61 }
  0xee   :  { %v802_v13 = vadd.f32 %v2076_v10, %v2734_v12  ;;  %v793_v14 = vpop.f32.mrb[7].mxu0  ;;  %v1035_v17 = vmax.f32 %v799_v40, 0.0 }
  0xef   :  { %v794_v20 = vadd.f32 %v793_v14, %v2702_v0  ;;  %v1033_v21 = vmax.f32 %v791_v11, 0.0  ;;  %v2826_v2 = vpop.permute.xlu1 %427 }
  0xf0   :  { %v1036_v18 = vmax.f32 %v802_v13, 0.0  ;;  %v2822_v59 = vpop.permute.xlu0 %422 }
  0xf1   :  { %v1034_v24 = vmax.f32 %v794_v20, 0.0 }
  0xf2   :  { %v2812_v23 = vpack.c.bf16 %v1036_v18, %v1035_v17 }
  0xf3   :  { %v2079_v27 = vpop.f32.mrb[8].mxu0  ;;  %v2816_v28 = vpack.c.bf16 %v1034_v24, %v1033_v21  ;;  %v2833_v17 = vpop.permute.xlu1 %347 }
  0xf4   :  { %v815_v30 = vadd.f32 %v2079_v27, %v213_v29  ;;  %v806_v61 = vpop.f32.mrb[9].mxu0  ;;  %v2830_v10 = vpop.permute.xlu0 %342 }
  0xf5   :  { %v2080_v12 = vpop.f32.mrb[10].mxu0  ;;  %v807_v49 = vadd.f32 %v806_v61, %v2752_v19 }
  0xf6   :  { %v818_v50 = vadd.f32 %v2080_v12, %v218_v31  ;;  %v809_v52 = vpop.f32.mrb[11].mxu0  ;;  %v1039_v53 = vmax.f32 %v815_v30, 0.0 }
  0xf7   :  { %v810_v55 = vadd.f32 %v809_v52, %v2760_v22  ;;  %v1037_v60 = vmax.f32 %v807_v49, 0.0 }
  0xf8   :  { %v1040_v0 = vmax.f32 %v818_v50, 0.0 }
  0xf9   :  { %v1038_v63 = vmax.f32 %v810_v55, 0.0 }
  0xfa   :  { %v2824_v62 = vpack.c.bf16 %v1040_v0, %v1039_v53 }
  0xfb   :  { %v2083_v29 = vpop.f32.mrb[12].mxu0  ;;  %v2828_v6 = vpack.c.bf16 %v1038_v63, %v1037_v60 }
  0xfc   :  { %v831_v51 = vadd.f32 %v2083_v29, %v233_v38  ;;  %v822_v40 = vpop.f32.mrb[13].mxu0 }
  0xfd   :  { %v2084_v19 = vpop.f32.mrb[14].mxu0  ;;  %v823_v31 = vadd.f32 %v822_v40, %v223_v34 }
  0xfe   :  { %v834_v9 = vadd.f32 %v2084_v19, %v238_v41  ;;  %v825_v11 = vpop.f32.mrb[15].mxu0  ;;  %v1043_v22 = vmax.f32 %v831_v51, 0.0  ;;  %v2840_v41 = vpop.permute.xlu0 %432 }
  0xff   :  { %v826_v14 = vadd.f32 %v825_v11, %v2782_v35  ;;  %v1041_v18 = vmax.f32 %v823_v31, 0.0  ;;  %v2844_v35 = vpop.permute.xlu1 %437 }
 0x100   :  { %v1044_v13 = vmax.f32 %v834_v9, 0.0 }
 0x101   :  { %v1042_v21 = vmax.f32 %v826_v14, 0.0 }
 0x102   :  { %v2835_v20 = vpack.c.bf16 %v1044_v13, %v1043_v22  ;;  %v2847_v63 = vpop.permute.xlu0 %352 }
 0x103   :  { %v2087_v24 = vpop.f32.mrb[16].mxu0  ;;  %v2837_v27 = vpack.c.bf16 %v1042_v21, %v1041_v18 }
 0x104   :  { %v847_v38 = vadd.f32 %v2087_v24, %v2658_v47  ;;  %v838_v34 = vpop.f32.mrb[17].mxu0 }
 0x105   :  { %v2088_v30 = vpop.f32.mrb[18].mxu0  ;;  %v839_v61 = vadd.f32 %v838_v34, %v2637_v39  ;;  %v2850_v39 = vpop.permute.xlu1 %357 }
 0x106   :  { %v850_v12 = vadd.f32 %v2088_v30, %v2660_v48  ;;  %v841_v49 = vpop.f32.mrb[19].mxu0  ;;  %v1047_v50 = vmax.f32 %v847_v38, 0.0 }
 0x107   :  { %v842_v53 = vadd.f32 %v841_v49, %v2648_v43  ;;  %v1045_v0 = vmax.f32 %v839_v61, 0.0 }
 0x108   :  { %v1048_v52 = vmax.f32 %v850_v12, 0.0 }
 0x109   :  { %v1046_v60 = vmax.f32 %v842_v53, 0.0  ;;  %v2859_v18 = vpop.permute.xlu1 %447 }
 0x10a   :  { %v1102_v55 = vpack.c.bf16 %v1048_v52, %v1047_v50 }
 0x10b   :  { %v2091_v47 = vpop.f32.mrb[20].mxu0  ;;  %v1101_v29 = vpack.c.bf16 %v1046_v60, %v1045_v0 }
 0x10c   :  { %v863_v51 = vadd.f32 %v2091_v47, %v2710_v3  ;;  %v854_v40 = vpop.f32.mrb[21].mxu0  ;;  %v2857_v3 = vpop.permute.xlu0 %442 }
 0x10d   :  { %v2092_v48 = vpop.f32.mrb[22].mxu0  ;;  %v855_v19 = vadd.f32 %v854_v40, %v2684_v57  ;;  %1939 = vmatprep.subr.bf16.mxu0 %v1101_v29  ;;  %2133 = vmatprep.subr.bf16.mxu1 %v1101_v29 }
 0x10e   :  { %v866_v31 = vadd.f32 %v2092_v48, %v2712_v4  ;;  %v857_v43 = vpop.f32.mrb[23].mxu0  ;;  %1940 = vmatpush3.bf16.msra.mxu0 %v2802_v8  ;;  %2141 = vmatpush3.bf16.msra.mxu1 %v2802_v8  ;;  %v1051_v9 = vmax.f32 %v863_v51, 0.0 }
 0x10f   :  { %v858_v22 = vadd.f32 %v857_v43, %v2686_v58  ;;  %1941 = vmatprep.subr.bf16.mxu0 %v1102_v55  ;;  %2134 = vmatprep.subr.bf16.mxu1 %v1102_v55  ;;  %v1049_v13 = vmax.f32 %v855_v19, 0.0 }
 0x110   :  { %v1052_v11 = vmax.f32 %v866_v31, 0.0  ;;  %v2866_v30 = vpop.permute.xlu0 %362 }
 0x111   :  { %v1050_v57 = vmax.f32 %v858_v22, 0.0 }
 0x112   :  { %v1104_v14 = vpack.c.bf16 %v1052_v11, %v1051_v9  ;;  %1942 = vmatpush3.bf16.msra.mxu0 %v2800_v5  ;;  %2142 = vmatpush3.bf16.msra.mxu1 %v2800_v5 }
 0x113   :  { %v2095_v4 = vpop.f32.mrb[24].mxu0  ;;  %v1103_v21 = vpack.c.bf16 %v1050_v57, %v1049_v13 }
 0x114   :  { %v879_v8 = vadd.f32 %v2095_v4, %v2768_v25  ;;  %v870_v24 = vpop.f32.mrb[25].mxu0  ;;  %v2871_v25 = vpop.permute.xlu1 %367 }
 0x115   :  { %v2096_v38 = vpop.f32.mrb[26].mxu0  ;;  %v871_v58 = vadd.f32 %v870_v24, %v2742_v15  ;;  %1943 = vmatprep.subr.bf16.mxu0 %v1103_v21  ;;  %2135 = vmatprep.subr.bf16.mxu1 %v1103_v21  ;;  %v2876_v55 = vpop.permute.xlu0 %452 }
 0x116   :  { %v882_v34 = vadd.f32 %v2096_v38, %v2770_v26  ;;  %v873_v61 = vpop.f32.mrb[27].mxu0  ;;  %1944 = vmatpush3.bf16.msra.mxu0 %v2816_v28  ;;  %2143 = vmatpush3.bf16.msra.mxu1 %v2816_v28  ;;  %v1055_v5 = vmax.f32 %v879_v8, 0.0  ;;  %v2192_v38 = vld [vmem:[%s3115_s3 + $0x44] ss:$16 sps:$4 sm:$0xff]  }
 0x117   :  { %v874_v49 = vadd.f32 %v873_v61, %v2744_v16  ;;  %1945 = vmatprep.subr.bf16.mxu0 %v1104_v14  ;;  %2136 = vmatprep.subr.bf16.mxu1 %v1104_v14  ;;  %v1053_v15 = vmax.f32 %v871_v58, 0.0 }
 0x118   :  { %v1056_v12 = vmax.f32 %v882_v34, 0.0  ;;  %v2880_v29 = vpop.permute.xlu1 %457 }
 0x119   :  { %v1054_v26 = vmax.f32 %v874_v49, 0.0  ;;  %v373_v31 = vpop.permute.xlu0 %372 }
 0x11a   :  { %v1106_v50 = vpack.c.bf16 %v1056_v12, %v1055_v5  ;;  %1946 = vmatpush3.bf16.msra.mxu0 %v2812_v23  ;;  %2144 = vmatpush3.bf16.msra.mxu1 %v2812_v23 }
 0x11b   :  { %v2099_v52 = vpop.f32.mrb[28].mxu0  ;;  %v1105_v53 = vpack.c.bf16 %v1054_v26, %v1053_v15 }
 0x11c   :  { %v895_v0 = vadd.f32 %v2099_v52, %v2784_v36  ;;  %v886_v28 = vpop.f32.mrb[29].mxu0 }
 0x11d   :  { %v2100_v60 = vpop.f32.mrb[30].mxu0  ;;  %v887_v16 = vadd.f32 %v886_v28, %v2778_v32  ;;  %1947 = vmatprep.subr.bf16.mxu0 %v1105_v53  ;;  %2137 = vmatprep.subr.bf16.mxu1 %v1105_v53 }
 0x11e   :  { %v898_v47 = vadd.f32 %v2100_v60, %v2786_v37  ;;  %v889_v51 = vpop.f32.mrb[31].mxu0  ;;  %1948 = vmatpush3.bf16.msra.mxu0 %v2828_v6  ;;  %2145 = vmatpush3.bf16.msra.mxu1 %v2828_v6  ;;  %v1059_v23 = vmax.f32 %v895_v0, 0.0  ;;  %v378_v6 = vpop.permute.xlu1 %377 }
 0x11f   :  { %v890_v36 = vadd.f32 %v889_v51, %v2780_v33  ;;  %1949 = vmatprep.subr.bf16.mxu0 %v1106_v50  ;;  %2138 = vmatprep.subr.bf16.mxu1 %v1106_v50  ;;  %v1057_v48 = vmax.f32 %v887_v16, 0.0 }
 0x120   :  { %v1060_v40 = vmax.f32 %v898_v47, 0.0 }
 0x121   :  { %v1058_v32 = vmax.f32 %v890_v36, 0.0 }
 0x122   :  { %v1108_v19 = vpack.c.bf16 %v1060_v40, %v1059_v23  ;;  %1950 = vmatpush3.bf16.msra.mxu0 %v2824_v62  ;;  %2146 = vmatpush3.bf16.msra.mxu1 %v2824_v62  ;;  %v2903_v24 = vpop.permute.xlu1 %467 }
 0x123   :  { %v2103_v37 = vpop.f32.mrb[32].mxu0  ;;  %v1107_v43 = vpack.c.bf16 %v1058_v32, %v1057_v48 }
 0x124   :  { %v911_v9 = vadd.f32 %v2103_v37, %v2814_v7  ;;  %v902_v11 = vpop.f32.mrb[33].mxu0  ;;  %v2893_v7 = vpop.permute.xlu0 %462 }
 0x125   :  { %v2104_v22 = vpop.f32.mrb[34].mxu0  ;;  %v903_v13 = vadd.f32 %v902_v11, %v2795_v56  ;;  %1951 = vmatprep.subr.bf16.mxu0 %v1107_v43  ;;  %2139 = vmatprep.subr.bf16.mxu1 %v1107_v43 }
 0x126   :  { %v914_v33 = vadd.f32 %v2104_v22, %v2818_v46  ;;  %v905_v14 = vpop.f32.mrb[35].mxu0  ;;  %1952 = vmatpush3.bf16.msra.mxu0 %v2837_v27  ;;  %2147 = vmatpush3.bf16.msra.mxu1 %v2837_v27  ;;  %v1063_v57 = vmax.f32 %v911_v9, 0.0  ;;  %v2186_v46 = vld [vmem:[%s3115_s3] ss:$16 sps:$4 sm:$0xff]   ;;  %v388_v53 = vpop.permute.xlu1 %387 }
 0x127   :  { %v906_v4 = vadd.f32 %v905_v14, %v2798_v1  ;;  %1953 = vmatprep.subr.bf16.mxu0 %v1108_v19  ;;  %2140 = vmatprep.subr.bf16.mxu1 %v1108_v19  ;;  %v1061_v21 = vmax.f32 %v903_v13, 0.0  ;;  %v2189_v27 = vld [vmem:[%s3115_s3 + $0x20] ss:$16 sps:$4 sm:$0xff]  }
 0x128   :  { %v1064_v62 = vmax.f32 %v914_v33, 0.0  ;;  %v383_v15 = vpop.permute.xlu0 %382  ;;  %v2197_v22 = vld [vmem:[%s3115_s3 + $0x60] ss:$16 sps:$4 sm:$0xff]  }
 0x129   :  { %v1062_v56 = vmax.f32 %v906_v4, 0.0 }
 0x12a   :  { %v2895_v8 = vpack.c.bf16 %v1064_v62, %v1063_v57  ;;  %1954 = vmatpush3.bf16.msra.mxu0 %v2835_v20  ;;  %2148 = vmatpush3.bf16.msra.mxu1 %v2835_v20  ;;  %v2929_v48 = vpop.permute.xlu1 %477 }
 0x12b   :  { %v2107_v1 = vpop.f32.mrb[36].mxu0  ;;  %v2910_v58 = vpack.c.bf16 %v1062_v56, %v1061_v21 }
 0x12c   :  { %v927_v34 = vadd.f32 %v2107_v1, %v2847_v63  ;;  %v918_v61 = vpop.f32.mrb[37].mxu0  ;;  %v2926_v23 = vpop.permute.xlu0 %472 }
 0x12d   :  { %v2108_v5 = vpop.f32.mrb[38].mxu0  ;;  %v919_v12 = vadd.f32 %v918_v61, %v2830_v10  ;;  %1446 = vmatmul.mubr.bf16.vlgmr.msra.gmra.mrb[64].mxu0 %v2186_v46  ;;  %1454 = vmatmul.mubr.bf16.vlgmr.msra.gmra.mrb[0].mxu1 %v2189_v27  ;;  %v2194_v10 = vld [vmem:[%s3115_s3 + $0x40] ss:$16 sps:$4 sm:$0xff]  }
 0x12e   :  { %v930_v49 = vadd.f32 %v2108_v5, %v2850_v39  ;;  %v921_v50 = vpop.f32.mrb[39].mxu0  ;;  %1461 = vmatprep.mubr.bf16.mxu1 %v2192_v38  ;;  %v1067_v20 = vmax.f32 %v927_v34, 0.0  ;;  %v2195_v39 = vld [vmem:[%s3115_s3 + $0x64] ss:$16 sps:$4 sm:$0xff]   ;;  %v398_v62 = vpop.permute.xlu1 %397  ;;  %v2200_v5 = vld [vmem:[%s3115_s3 + $0x80] ss:$16 sps:$4 sm:$0xff]  }
 0x12f   :  { %v922_v52 = vadd.f32 %v921_v50, %v2833_v17  ;;  %v1065_v0 = vmax.f32 %v919_v12, 0.0 }
 0x130   :  { %v1068_v26 = vmax.f32 %v930_v49, 0.0  ;;  %v393_v13 = vpop.permute.xlu0 %392  ;;  %v2201_v49 = vld [vmem:[%s3115_s3 + $0xa4] ss:$16 sps:$4 sm:$0xff]  }
 0x131   :  { %v1066_v63 = vmax.f32 %v922_v52, 0.0 }
 0x132   :  { %v2916_v28 = vpack.c.bf16 %v1068_v26, %v1067_v20 }
 0x133   :  { %v2111_v60 = vpop.f32.mrb[40].mxu0  ;;  %v2924_v16 = vpack.c.bf16 %v1066_v63, %v1065_v0 }
 0x134   :  { %v943_v47 = vadd.f32 %v2111_v60, %v373_v31  ;;  %v934_v51 = vpop.f32.mrb[41].mxu0 }
 0x135   :  { %v2112_v17 = vpop.f32.mrb[42].mxu0  ;;  %v935_v40 = vadd.f32 %v934_v51, %v2866_v30  ;;  %1462 = vmatmul.mubr.bf16.gmra.mrb[4].mxu1 %v2194_v10 }
 0x136   :  { %v946_v36 = vadd.f32 %v2112_v17, %v378_v6  ;;  %v937_v19 = vpop.f32.mrb[43].mxu0  ;;  %1469 = vmatprep.mubr.bf16.mxu1 %v2195_v39  ;;  %v1071_v32 = vmax.f32 %v943_v47, 0.0  ;;  %v2198_v6 = vld [vmem:[%s3115_s3 + $0x84] ss:$16 sps:$4 sm:$0xff]  }
 0x137   :  { %v938_v43 = vadd.f32 %v937_v19, %v2871_v25  ;;  %v1069_v9 = vmax.f32 %v935_v40, 0.0 }
 0x138   :  { %v1072_v37 = vmax.f32 %v946_v36, 0.0 }
 0x139   :  { %v1070_v31 = vmax.f32 %v938_v43, 0.0 }
 0x13a   :  { %v2932_v11 = vpack.c.bf16 %v1072_v37, %v1071_v32 }
 0x13b   :  { %v2115_v30 = vpop.f32.mrb[44].mxu0  ;;  %v2940_v33 = vpack.c.bf16 %v1070_v31, %v1069_v9 }
 0x13c   :  { %v959_v14 = vadd.f32 %v2115_v30, %v393_v13  ;;  %v950_v57 = vpop.f32.mrb[45].mxu0 }
 0x13d   :  { %v2116_v25 = vpop.f32.mrb[46].mxu0  ;;  %v951_v4 = vadd.f32 %v950_v57, %v383_v15  ;;  %1470 = vmatmul.mubr.bf16.gmra.mrb[8].mxu1 %v2197_v22 }
 0x13e   :  { %v962_v21 = vadd.f32 %v2116_v25, %v398_v62  ;;  %v953_v56 = vpop.f32.mrb[47].mxu0  ;;  %1477 = vmatprep.mubr.bf16.mxu1 %v2198_v6  ;;  %v1075_v46 = vmax.f32 %v959_v14, 0.0 }
 0x13f   :  { %v954_v1 = vadd.f32 %v953_v56, %v388_v53  ;;  %v1073_v38 = vmax.f32 %v951_v4, 0.0 }
 0x140   :  { %v1076_v27 = vmax.f32 %v962_v21, 0.0 }
 0x141   :  { %v1074_v61 = vmax.f32 %v954_v1, 0.0 }
 0x142   :  { %v2942_v34 = vpack.c.bf16 %v1076_v27, %v1075_v46 }
 0x143   :  { %v2119_v12 = vpop.f32.mrb[48].mxu0  ;;  %v2950_v15 = vpack.c.bf16 %v1074_v61, %v1073_v38 }
 0x144   :  { %v975_v50 = vadd.f32 %v2119_v12, %v2805_v54  ;;  %v966_v20 = vpop.f32.mrb[49].mxu0  ;;  %v2203_v54 = vld [vmem:[%s3115_s3 + $0xa0] ss:$16 sps:$4 sm:$0xff]  }
 0x145   :  { %v967_v26 = vadd.f32 %v966_v20, %v2788_v42  ;;  %v2120_v52 = vpop.f32.mrb[50].mxu0  ;;  %1478 = vmatmul.mubr.bf16.gmra.mrb[12].mxu1 %v2200_v5  ;;  %v2204_v42 = vld [vmem:[%s3115_s3 + $0xc4] ss:$16 sps:$4 sm:$0xff]  }
 0x146   :  { %v978_v53 = vadd.f32 %v2120_v52, %v2809_v44  ;;  %v969_v0 = vpop.f32.mrb[51].mxu0  ;;  %1485 = vmatprep.mubr.bf16.mxu1 %v2201_v49  ;;  %v1079_v10 = vmax.f32 %v975_v50, 0.0 }
 0x147   :  { %v970_v63 = vadd.f32 %v969_v0, %v2790_v45  ;;  %v1077_v39 = vmax.f32 %v967_v26, 0.0  ;;  %v2224_v0 = vld [vmem:[%s3115_s3 + $0x88] ss:$16 sps:$4 sm:$0xff]  }
 0x148   :  { %v1080_v60 = vmax.f32 %v978_v53, 0.0  ;;  %v2222_v53 = vld [vmem:[%s3115_s3 + $0x8c] ss:$16 sps:$4 sm:$0xff]  }
 0x149   :  { %v1078_v47 = vmax.f32 %v970_v63, 0.0  ;;  %v2225_v63 = vld [vmem:[%s3115_s3 + $0xac] ss:$16 sps:$4 sm:$0xff]  }
 0x14a   :  { %v1118_v51 = vpack.c.bf16 %v1080_v60, %v1079_v10  ;;  %v2227_v10 = vld [vmem:[%s3115_s3 + $0xa8] ss:$16 sps:$4 sm:$0xff]   ;;  %v2228_v60 = vld [vmem:[%s3115_s3 + $0xcc] ss:$16 sps:$4 sm:$0xff]  }
 0x14b   :  { %v1117_v17 = vpack.c.bf16 %v1078_v47, %v1077_v39  ;;  %v2123_v40 = vpop.f32.mrb[52].mxu0  ;;  %v2230_v39 = vld [vmem:[%s3115_s3 + $0xc8] ss:$16 sps:$4 sm:$0xff]   ;;  %v2231_v47 = vld [vmem:[%s3115_s3 + $0xec] ss:$16 sps:$4 sm:$0xff]  }
 0x14c   :  { %v991_v44 = vadd.f32 %v2123_v40, %v2840_v41  ;;  %v982_v36 = vpop.f32.mrb[53].mxu0 }
 0x14d   :  { %v983_v45 = vadd.f32 %v982_v36, %v2822_v59  ;;  %v2124_v19 = vpop.f32.mrb[54].mxu0  ;;  %2003 = vmatprep.subr.bf16.mxu1 %v1117_v17  ;;  %1486 = vmatmul.mubr.bf16.gmra.mrb[16].mxu1 %v2203_v54  ;;  %v2206_v59 = vld [vmem:[%s3115_s3 + $0xc0] ss:$16 sps:$4 sm:$0xff]  }
 0x14e   :  { %v994_v32 = vadd.f32 %v2124_v19, %v2844_v35  ;;  %v985_v37 = vpop.f32.mrb[55].mxu0  ;;  %2004 = vmatpush3.bf16.msra.mxu1 %v2910_v58  ;;  %1493 = vmatprep.mubr.bf16.mxu1 %v2204_v42  ;;  %v1083_v9 = vmax.f32 %v991_v44, 0.0 }
 0x14f   :  { %v986_v43 = vadd.f32 %v985_v37, %v2826_v2  ;;  %2005 = vmatprep.subr.bf16.mxu1 %v1118_v51  ;;  %v1081_v22 = vmax.f32 %v983_v45, 0.0  ;;  %v2207_v2 = vld [vmem:[%s3115_s3 + $0xe4] ss:$16 sps:$4 sm:$0xff]   ;;  %v2233_v51 = vld [vmem:[%s3115_s3 + $0xe8] ss:$16 sps:$4 sm:$0xff]  }
 0x150   :  { %v1084_v31 = vmax.f32 %v994_v32, 0.0 }
 0x151   :  { %v1082_v13 = vmax.f32 %v986_v43, 0.0 }
 0x152   :  { %v1120_v41 = vpack.c.bf16 %v1084_v31, %v1083_v9  ;;  %2006 = vmatpush3.bf16.msra.mxu1 %v2895_v8 }
 0x153   :  { %v1119_v30 = vpack.c.bf16 %v1082_v13, %v1081_v22  ;;  %v2127_v35 = vpop.f32.mrb[56].mxu0 }
 0x154   :  { %v1007_v58 = vadd.f32 %v2127_v35, %v2876_v55  ;;  %v998_v6 = vpop.f32.mrb[57].mxu0 }
 0x155   :  { %v999_v14 = vadd.f32 %v998_v6, %v2857_v3  ;;  %v2128_v57 = vpop.f32.mrb[58].mxu0  ;;  %2007 = vmatprep.subr.bf16.mxu1 %v1119_v30  ;;  %1494 = vmatmul.mubr.bf16.gmra.mrb[20].mxu1 %v2206_v59  ;;  %v2209_v3 = vld [vmem:[%s3115_s3 + $0xe0] ss:$16 sps:$4 sm:$0xff]  }
 0x156   :  { %v1010_v62 = vadd.f32 %v2128_v57, %v2880_v29  ;;  %v1001_v25 = vpop.f32.mrb[59].mxu0  ;;  %2008 = vmatpush3.bf16.msra.mxu1 %v2924_v16  ;;  %1501 = vmatprep.mubr.bf16.mxu1 %v2207_v2  ;;  %v1087_v8 = vmax.f32 %v1007_v58, 0.0 }
 0x157   :  { %v1002_v4 = vadd.f32 %v1001_v25, %v2859_v18  ;;  %2009 = vmatprep.subr.bf16.mxu1 %v1120_v41  ;;  %v1085_v56 = vmax.f32 %v999_v14, 0.0  ;;  %v2212_v18 = vld [vmem:[%s3115_s3 + $0xc] ss:$16 sps:$4 sm:$0xff]  }
 0x158   :  { %v1088_v21 = vmax.f32 %v1010_v62, 0.0 }
 0x159   :  { %v1086_v46 = vmax.f32 %v1002_v4, 0.0 }
 0x15a   :  { %v1122_v55 = vpack.c.bf16 %v1088_v21, %v1087_v8  ;;  %2010 = vmatpush3.bf16.msra.mxu1 %v2916_v28 }
 0x15b   :  { %v1121_v27 = vpack.c.bf16 %v1086_v46, %v1085_v56  ;;  %v2131_v29 = vpop.f32.mrb[60].mxu0 }
 0x15c   :  { %v1023_v16 = vadd.f32 %v2131_v29, %v2926_v23  ;;  %v1014_v1 = vpop.f32.mrb[61].mxu0  ;;  %v1176_v29 = vpop.permute.xlu0 %1175 }
 0x15d   :  { %v1015_v38 = vadd.f32 %v1014_v1, %v2893_v7  ;;  %v2132_v61 = vpop.f32.mrb[62].mxu0  ;;  %2011 = vmatprep.subr.bf16.mxu1 %v1121_v27  ;;  %1502 = vmatmul.mubr.bf16.gmra.mrb[24].mxu1 %v2209_v3  ;;  %v2210_v7 = vld [vmem:[%s3115_s3 + $0x8] ss:$16 sps:$4 sm:$0xff]   ;;  %v1181_v1 = vpop.permute.xlu1 %1180 }
 0x15e   :  { %v1026_v5 = vadd.f32 %v2132_v61, %v2929_v48  ;;  %v1017_v12 = vpop.f32.mrb[63].mxu0  ;;  %2012 = vmatpush3.bf16.msra.mxu1 %v2940_v33  ;;  %1542 = vmatprep.mubr.bf16.mxu1 %v2212_v18  ;;  %v1091_v28 = vmax.f32 %v1023_v16, 0.0  ;;  %v2215_v48 = vld [vmem:[%s3115_s3 + $0x28] ss:$16 sps:$4 sm:$0xff]  }
 0x15f   :  { %v1018_v49 = vadd.f32 %v1017_v12, %v2903_v24  ;;  %2013 = vmatprep.subr.bf16.mxu1 %v1122_v55  ;;  %v1089_v20 = vmax.f32 %v1015_v38, 0.0  ;;  %v2213_v24 = vld [vmem:[%s3115_s3 + $0x2c] ss:$16 sps:$4 sm:$0xff]   ;;  %v2218_v33 = vld [vmem:[%s3115_s3 + $0x48] ss:$16 sps:$4 sm:$0xff]  }
 0x160   :  { %v1092_v50 = vmax.f32 %v1026_v5, 0.0  ;;  %v1186_v61 = vpop.permute.xlu0 %1185 }
 0x161   :  { %v1090_v26 = vmax.f32 %v1018_v49, 0.0 }
 0x162   :  { %v1124_v23 = vpack.c.bf16 %v1092_v50, %v1091_v28  ;;  %2014 = vmatpush3.bf16.msra.mxu1 %v2932_v11  ;;  %v2216_v11 = vld [vmem:[%s3115_s3 + $0x4c] ss:$16 sps:$4 sm:$0xff]   ;;  %v1191_v28 = vpop.permute.xlu1 %1190 }
 0x163   :  { %v1123_v52 = vpack.c.bf16 %v1090_v26, %v1089_v20 }
 0x164   :  { %v1196_v26 = vpop.permute.xlu0 %1195 }
 0x165   :  { %2015 = vmatprep.subr.bf16.mxu1 %v1123_v52 }
 0x166   :  { %2016 = vmatpush3.bf16.msra.mxu1 %v2950_v15  ;;  %v2221_v15 = vld [vmem:[%s3115_s3 + $0x68] ss:$16 sps:$4 sm:$0xff]   ;;  %v1642_v52 = vpop.permute.xlu1 %1641 }
 0x167   :  { %2017 = vmatprep.subr.bf16.mxu1 %v1124_v23 }
 0x16a   :  { %2018 = vmatpush3.bf16.msra.mxu1 %v2942_v34  ;;  %v2219_v34 = vld [vmem:[%s3115_s3 + $0x6c] ss:$16 sps:$4 sm:$0xff]   ;;  %s2263_s3 = smov [#allocation3]  }
 0x16b   :  { %s1802_s9 = sshll.u32 %s2263_s3, 4  ;;  %s1803_s9 = int_to_ptr.vmem [resolvable:$true] %s1802_s9 }
 0x16c   :  { %s2238_s6 = scalar_lea.vmem %s1803_s9, 16  ;;  %s2242_s10 = scalar_lea.vmem %s1803_s9, 32 }
 0x16d   :  { %1543 = vmatmul.mubr.bf16.vlgmr.msra.gmra.mrb[28].mxu1 %v2210_v7  ;;  %p2239_p0 = scmp.ne.s32.totalorder %s1803_s9, %s2238_s6  ;;  %p2243_p1 = scmp.lt.s32.totalorder %s1803_s9, %s1803_s9 }
 0x16e   :  { %1550 = vmatprep.mubr.bf16.mxu1 %v2213_v24  ;;  %p2244_p2 = scmp.lt.s32.totalorder %s2242_s10, %s2238_s6 }
 0x170   :  { %p2245_p3 = por %p2244_p2, %p2243_p1 }
 0x172   :  { %p2246_p4 = pnand %p2245_p3, %p2239_p0 }
 0x175   :  { %1551 = vmatmul.mubr.bf16.gmra.mrb[32].mxu1 %v2215_v48 }
 0x176   :  { %1558 = vmatprep.mubr.bf16.mxu1 %v2216_v11 }
 0x17d   :  { %1559 = vmatmul.mubr.bf16.gmra.mrb[36].mxu1 %v2218_v33 }
 0x17e   :  { %1566 = vmatprep.mubr.bf16.mxu1 %v2219_v34  ;;  %v1647_v34 = vpop.permute.xlu0 %1646 }
 0x185   :  { %1567 = vmatmul.mubr.bf16.gmra.mrb[40].mxu1 %v2221_v15  ;;  %v1201_v15 = vpop.permute.xlu1 %1200 }
 0x186   :  { %1574 = vmatprep.mubr.bf16.mxu1 %v2222_v53  ;;  %v1652_v53 = vpop.permute.xlu0 %1651 }
 0x18d   :  { %1575 = vmatmul.mubr.bf16.gmra.mrb[44].mxu1 %v2224_v0  ;;  %v1206_v0 = vpop.permute.xlu1 %1205 }
 0x18e   :  { %1582 = vmatprep.mubr.bf16.mxu1 %v2225_v63 }
 0x195   :  { %1583 = vmatmul.mubr.bf16.gmra.mrb[48].mxu1 %v2227_v10  ;;  %v1657_v10 = vpop.permute.xlu0 %1656 }
 0x196   :  { %1590 = vmatprep.mubr.bf16.mxu1 %v2228_v60 }
 0x19d   :  { %1591 = vmatmul.mubr.bf16.gmra.mrb[52].mxu1 %v2230_v39 }
 0x19e   :  { %1598 = vmatprep.mubr.bf16.mxu1 %v2231_v47 }
 0x1a5   :  { %1599 = vmatmul.mubr.bf16.gmra.mrb[56].mxu1 %v2233_v51 }
 0x200   :  { %v1955_v54 = vpop.f32.mrb[64].mxu0  ;;  %v1961_v17 = vpop.f32.mrb[0].mxu1 }
 0x201   :  { %v1956_v40 = vpop.f32.mrb[65].mxu0  ;;  %v1962_v42 = vpop.f32.mrb[1].mxu1 }
 0x202   :  { %v1957_v44 = vadd.f32 %v1956_v40, %v1955_v54  ;;  %v3039_v36 = vadd.f32 %v1962_v42, %v1961_v17  ;;  %v1958_v45 = vpop.f32.mrb[66].mxu0  ;;  %v1964_v19 = vpop.f32.mrb[2].mxu1 }
 0x203   :  { %v1959_v32 = vpop.f32.mrb[67].mxu0  ;;  %v1965_v37 = vpop.f32.mrb[3].mxu1 }
 0x204   :  { %v1960_v43 = vadd.f32 %v1959_v32, %v1958_v45  ;;  %v3041_v9 = vadd.f32 %v1965_v37, %v1964_v19  ;;  %v1448_v39 = vadd.f32 %v1957_v44, %v1176_v29  ;;  %v1211_v54 = vpop.permute.xlu1 %1210  ;;  %v1662_v37 = vpop.permute.xlu0 %1661 }
 0x206   :  { %v1451_v40 = vadd.f32 %v1960_v43, %v1181_v1 }
 0x208   :  { %v1967_v31 = vpop.f32.mrb[4].mxu1 }
 0x209   :  { %v1968_v22 = vpop.f32.mrb[5].mxu1 }
 0x20a   :  { %v3043_v13 = vadd.f32 %v1968_v22, %v1967_v31  ;;  %v1970_v41 = vpop.f32.mrb[6].mxu1 }
 0x20b   :  { %v1971_v59 = vpop.f32.mrb[7].mxu1 }
 0x20c   :  { %v3045_v30 = vadd.f32 %v1971_v59, %v1970_v41  ;;  %v3067_v59 = vpop.permute.xlu1 %1215 }
 0x210   :  { %v1973_v35 = vpop.f32.mrb[8].mxu1  ;;  %v1221_v1 = vpop.permute.xlu1 %1220 }
 0x211   :  { %v1974_v2 = vpop.f32.mrb[9].mxu1 }
 0x212   :  { %v3047_v58 = vadd.f32 %v1974_v2, %v1973_v35  ;;  %v1976_v6 = vpop.f32.mrb[10].mxu1  ;;  %v1456_v2 = vadd.f32 %v3039_v36, %v1186_v61 }
 0x213   :  { %v1977_v14 = vpop.f32.mrb[11].mxu1 }
 0x214   :  { %v3049_v57 = vadd.f32 %v1977_v14, %v1976_v6 }
 0x218   :  { %v1979_v62 = vpop.f32.mrb[12].mxu1 }
 0x219   :  { %v1980_v25 = vpop.f32.mrb[13].mxu1 }
 0x21a   :  { %v3051_v4 = vadd.f32 %v1980_v25, %v1979_v62  ;;  %v1982_v8 = vpop.f32.mrb[14].mxu1  ;;  %v1459_v62 = vadd.f32 %v3041_v9, %v1191_v28 }
 0x21b   :  { %v1983_v21 = vpop.f32.mrb[15].mxu1 }
 0x21c   :  { %v3053_v56 = vadd.f32 %v1983_v21, %v1982_v8 }
 0x220   :  { %v1985_v46 = vpop.f32.mrb[16].mxu1 }
 0x221   :  { %v1986_v55 = vpop.f32.mrb[17].mxu1 }
 0x222   :  { %v3055_v3 = vadd.f32 %v1986_v55, %v1985_v46  ;;  %v1988_v27 = vpop.f32.mrb[18].mxu1  ;;  %v1667_v55 = vpop.permute.xlu0 %1666 }
 0x223   :  { %v1989_v18 = vpop.f32.mrb[19].mxu1 }
 0x224   :  { %v3057_v16 = vadd.f32 %v1989_v18, %v1988_v27 }
 0x228   :  { %v1991_v38 = vpop.f32.mrb[20].mxu1 }
 0x229   :  { %v1992_v5 = vpop.f32.mrb[21].mxu1 }
 0x22a   :  { %v3059_v12 = vadd.f32 %v1992_v5, %v1991_v38  ;;  %v1994_v49 = vpop.f32.mrb[22].mxu1 }
 0x22b   :  { %v1995_v50 = vpop.f32.mrb[23].mxu1 }
 0x22c   :  { %v3061_v20 = vadd.f32 %v1995_v50, %v1994_v49  ;;  %v1464_v49 = vadd.f32 %v3043_v13, %v1196_v26 }
 0x230   :  { %v1997_v23 = vpop.f32.mrb[24].mxu1 }
 0x231   :  { %v1998_v7 = vpop.f32.mrb[25].mxu1 }
 0x232   :  { %v3063_v24 = vadd.f32 %v1998_v7, %v1997_v23  ;;  %v2000_v48 = vpop.f32.mrb[26].mxu1 }
 0x233   :  { %v2001_v11 = vpop.f32.mrb[27].mxu1 }
 0x234   :  { %v3065_v33 = vadd.f32 %v2001_v11, %v2000_v48  ;;  %v1467_v11 = vadd.f32 %v3045_v30, %v1201_v15 }
 0x240   :  { %v2019_v63 = vpop.f32.mrb[28].mxu1 }
 0x241   :  { %v2020_v60 = vpop.f32.mrb[29].mxu1 }
 0x242   :  { %v2021_v47 = vadd.f32 %v2020_v60, %v2019_v63  ;;  %v2022_v51 = vpop.f32.mrb[30].mxu1 }
 0x243   :  { %v2023_v17 = vpop.f32.mrb[31].mxu1 }
 0x244   :  { %v1545_v42 = vadd.f32 %v2021_v47, %v1448_v39  ;;  %v2024_v45 = vadd.f32 %v2023_v17, %v2022_v51 }
 0x246   :  { %v1607_v19 = vmax.f32 %v1545_v42, 0.0  ;;  %v1548_v32 = vadd.f32 %v2024_v45, %v1451_v40  ;;  %v1472_v42 = vadd.f32 %v3047_v58, %v1206_v0 }
 0x248   :  { %v1719_v31 = vmul.f32 %v1642_v52, %v1607_v19  ;;  %v1608_v22 = vmax.f32 %v1548_v32, 0.0  ;;  %v2025_v41 = vpop.f32.mrb[32].mxu1  ;;  %v1672_v52 = vpop.permute.xlu0 %1671 }
 0x249   :  { %v2026_v35 = vpop.f32.mrb[33].mxu1 }
 0x24a   :  { %v1720_v44 = vmul.f32 %v1647_v34, %v1608_v22  ;;  %v2027_v6 = vadd.f32 %v2026_v35, %v2025_v41  ;;  %v2028_v14 = vpop.f32.mrb[34].mxu1  ;;  %v1736_v25 = vsel %vm1735_vm1, %v1719_v31, 0.0  ;;  %v1475_v41 = vadd.f32 %v3049_v57, %v1211_v54 }
 0x24b   :  { %v2029_v43 = vpop.f32.mrb[35].mxu1 }
 0x24c   :  { %v1737_v8 = vsel %vm1735_vm1, %v1720_v44, 0.0  ;;  %v1553_v21 = vadd.f32 %v2027_v6, %v1456_v2  ;;  %v2030_v46 = vadd.f32 %v2029_v43, %v2028_v14  ;;  %v1677_v40 = vpop.permute.xlu0 %1676 }
 0x24d   :  { %v1738_v27 = vadd.f32 %v1737_v8, %v1736_v25 }
 0x24e   :  { %v1609_v29 = vmax.f32 %v1553_v21, 0.0  ;;  %v1556_v18 = vadd.f32 %v2030_v46, %v1459_v62  ;;  %v1480_v21 = vadd.f32 %v3051_v4, %v3067_v59 }
 0x250   :  { %v1721_v38 = vmul.f32 %v1652_v53, %v1609_v29  ;;  %v1610_v5 = vmax.f32 %v1556_v18, 0.0  ;;  %v2031_v36 = vpop.f32.mrb[36].mxu1  ;;  %v1226_v53 = vpop.permute.xlu1 %1225  ;;  %v1483_v18 = vadd.f32 %v3053_v56, %v1221_v1 }
 0x251   :  { %v2032_v61 = vpop.f32.mrb[37].mxu1  ;;  %v1682_v62 = vpop.permute.xlu0 %1681 }
 0x252   :  { %v1739_v9 = vsel %vm1735_vm1, %v1721_v38, 0.0  ;;  %v1722_v28 = vmul.f32 %v1657_v10, %v1610_v5  ;;  %v2033_v50 = vadd.f32 %v2032_v61, %v2031_v36  ;;  %v2034_v23 = vpop.f32.mrb[38].mxu1 }
 0x253   :  { %v1740_v7 = vadd.f32 %v1739_v9, %v1738_v27  ;;  %v2035_v48 = vpop.f32.mrb[39].mxu1 }
 0x254   :  { %v1741_v34 = vsel %vm1735_vm1, %v1722_v28, 0.0  ;;  %v1561_v63 = vadd.f32 %v2033_v50, %v1464_v49  ;;  %v2036_v60 = vadd.f32 %v2035_v48, %v2034_v23  ;;  %v1231_v15 = vpop.permute.xlu1 %1230 }
 0x255   :  { %v1742_v39 = vadd.f32 %v1741_v34, %v1740_v7  ;;  %v1687_v61 = vpop.permute.xlu0 %1686  ;;  %v1488_v7 = vadd.f32 %v3055_v3, %v1226_v53 }
 0x256   :  { %v1611_v47 = vmax.f32 %v1561_v63, 0.0  ;;  %v1564_v51 = vadd.f32 %v2036_v60, %v1467_v11 }
 0x258   :  { %v1723_v17 = vmul.f32 %v1662_v37, %v1611_v47  ;;  %v1612_v13 = vmax.f32 %v1564_v51, 0.0  ;;  %v2037_v26 = vpop.f32.mrb[40].mxu1  ;;  %v1236_v25 = vpop.permute.xlu1 %1235 }
 0x259   :  { %v2038_v10 = vpop.f32.mrb[41].mxu1  ;;  %v1692_v1 = vpop.permute.xlu0 %1691 }
 0x25a   :  { %v1743_v45 = vsel %vm1735_vm1, %v1723_v17, 0.0  ;;  %v1724_v19 = vmul.f32 %v1667_v55, %v1612_v13  ;;  %v2039_v32 = vadd.f32 %v2038_v10, %v2037_v26  ;;  %v2040_v30 = vpop.f32.mrb[42].mxu1 }
 0x25b   :  { %v1744_v31 = vadd.f32 %v1743_v45, %v1742_v39  ;;  %v2041_v22 = vpop.f32.mrb[43].mxu1  ;;  %v1491_v39 = vadd.f32 %v3057_v16, %v1231_v15 }
 0x25c   :  { %v1745_v35 = vsel %vm1735_vm1, %v1724_v19, 0.0  ;;  %v1569_v2 = vadd.f32 %v2039_v32, %v1472_v42  ;;  %v2042_v37 = vadd.f32 %v2041_v22, %v2040_v30  ;;  %v1241_v50 = vpop.permute.xlu1 %1240  ;;  %v1496_v32 = vadd.f32 %v3059_v12, %v1236_v25 }
 0x25d   :  { %v1746_v44 = vadd.f32 %v1745_v35, %v1744_v31  ;;  %v1697_v45 = vpop.permute.xlu0 %1696 }
 0x25e   :  { %v1613_v6 = vmax.f32 %v1569_v2, 0.0  ;;  %v1572_v14 = vadd.f32 %v2042_v37, %v1475_v41  ;;  %v1499_v2 = vadd.f32 %v3061_v20, %v1241_v50 }
 0x260   :  { %v1725_v43 = vmul.f32 %v1672_v52, %v1613_v6  ;;  %v1614_v58 = vmax.f32 %v1572_v14, 0.0  ;;  %v2043_v0 = vpop.f32.mrb[44].mxu1  ;;  %v1246_v13 = vpop.permute.xlu1 %1245 }
 0x261   :  { %v2044_v8 = vpop.f32.mrb[45].mxu1 }
 0x262   :  { %v1747_v46 = vsel %vm1735_vm1, %v1725_v43, 0.0  ;;  %v1726_v55 = vmul.f32 %v1677_v40, %v1614_v58  ;;  %v2045_v57 = vadd.f32 %v2044_v8, %v2043_v0  ;;  %v2046_v54 = vpop.f32.mrb[46].mxu1  ;;  %v1702_v58 = vpop.permute.xlu0 %1701 }
 0x263   :  { %v1748_v27 = vadd.f32 %v1747_v46, %v1746_v44  ;;  %v2047_v29 = vpop.f32.mrb[47].mxu1  ;;  %v1504_v46 = vadd.f32 %v3063_v24, %v1246_v13 }
 0x264   :  { %v1749_v38 = vsel %vm1735_vm1, %v1726_v55, 0.0  ;;  %v1577_v5 = vadd.f32 %v2045_v57, %v1480_v21  ;;  %v2048_v36 = vadd.f32 %v2047_v29, %v2046_v54  ;;  %v1251_v15 = vpop.permute.xlu1 %1250 }
 0x265   :  { %v1750_v49 = vadd.f32 %v1749_v38, %v1748_v27 }
 0x266   :  { %v1615_v9 = vmax.f32 %v1577_v5, 0.0  ;;  %v1580_v28 = vadd.f32 %v2048_v36, %v1483_v18  ;;  %v1507_v18 = vadd.f32 %v3065_v33, %v1251_v15 }
 0x268   :  { %v1727_v23 = vmul.f32 %v1682_v62, %v1615_v9  ;;  %v1616_v4 = vmax.f32 %v1580_v28, 0.0  ;;  %v2049_v59 = vpop.f32.mrb[48].mxu1  ;;  %v1707_v8 = vpop.permute.xlu1 %1706 }
 0x269   :  { %v2050_v52 = vpop.f32.mrb[49].mxu1  ;;  %v1712_v28 = vpop.permute.xlu0 %1711 }
 0x26a   :  { %v1751_v48 = vsel %vm1735_vm1, %v1727_v23, 0.0  ;;  %v1728_v11 = vmul.f32 %v1687_v61, %v1616_v4  ;;  %v2051_v34 = vadd.f32 %v2050_v52, %v2049_v59  ;;  %v2052_v56 = vpop.f32.mrb[50].mxu1 }
 0x26b   :  { %v1752_v63 = vadd.f32 %v1751_v48, %v1750_v49  ;;  %v2053_v60 = vpop.f32.mrb[51].mxu1  ;;  %v1779_v48 = vlaneseq }
 0x26c   :  { %v1753_v47 = vsel %vm1735_vm1, %v1728_v11, 0.0  ;;  %v1585_v51 = vadd.f32 %v2051_v34, %v1488_v7  ;;  %v2054_v17 = vadd.f32 %v2053_v60, %v2052_v56  ;;  %v1717_v24 = vpop.permute.xlu1 %1716 }
 0x26d   :  { %v1754_v26 = vadd.f32 %v1753_v47, %v1752_v63  ;;  %v1780_v34 = vshrl.u32 %v1779_v48, 7 }
 0x26e   :  { %v1617_v40 = vmax.f32 %v1585_v51, 0.0  ;;  %v1588_v10 = vadd.f32 %v2054_v17, %v1491_v39  ;;  %v1777_v39 = vpop.permute.xlu0 %1776 }
 0x26f   :  { %v1781_v63 = vsub.s32 0, %v1780_v34 }
 0x270   :  { %v1729_v42 = vmul.f32 %v1692_v1, %v1617_v40  ;;  %v1618_v3 = vmax.f32 %v1588_v10, 0.0  ;;  %v2055_v53 = vpop.f32.mrb[52].mxu1 }
 0x271   :  { %v2056_v19 = vpop.f32.mrb[53].mxu1  ;;  %v1782_v51 = vrot.slane %v1777_v39, %v1781_v63 }
 0x272   :  { %v1755_v30 = vsel %vm1735_vm1, %v1729_v42, 0.0  ;;  %v1730_v31 = vmul.f32 %v1697_v45, %v1618_v3  ;;  %v2057_v22 = vadd.f32 %v2056_v19, %v2055_v53  ;;  %v2058_v16 = vpop.f32.mrb[54].mxu1 }
 0x273   :  { %v1756_v41 = vadd.f32 %v1755_v30, %v1754_v26  ;;  %v2059_v35 = vpop.f32.mrb[55].mxu1 }
 0x274   :  { %v1757_v37 = vsel %vm1735_vm1, %v1730_v31, 0.0  ;;  %v1593_v44 = vadd.f32 %v2057_v22, %v1496_v32  ;;  %v2060_v6 = vadd.f32 %v2059_v35, %v2058_v16 }
 0x275   :  { %v1758_v14 = vadd.f32 %v1757_v37, %v1756_v41 }
 0x276   :  { %v1619_v62 = vmax.f32 %v1593_v44, 0.0  ;;  %v1596_v43 = vadd.f32 %v2060_v6, %v1499_v2 }
 0x278   :  { %v1731_v0 = vmul.f32 %v1702_v58, %v1619_v62  ;;  %v1620_v12 = vmax.f32 %v1596_v43, 0.0  ;;  %v2061_v25 = vpop.f32.mrb[56].mxu1 }
 0x279   :  { %v2062_v21 = vpop.f32.mrb[57].mxu1 }
 0x27a   :  { %v1759_v55 = vsel %vm1735_vm1, %v1731_v0, 0.0  ;;  %v1732_v57 = vmul.f32 %v1707_v8, %v1620_v12  ;;  %v2063_v54 = vadd.f32 %v2062_v21, %v2061_v25  ;;  %v2064_v20 = vpop.f32.mrb[58].mxu1 }
 0x27b   :  { %v1760_v27 = vadd.f32 %v1759_v55, %v1758_v14  ;;  %v2065_v29 = vpop.f32.mrb[59].mxu1 }
 0x27c   :  { %v1761_v38 = vsel %vm1735_vm1, %v1732_v57, 0.0  ;;  %v1601_v5 = vadd.f32 %v2063_v54, %v1504_v46  ;;  %v2066_v36 = vadd.f32 %v2065_v29, %v2064_v20 }
 0x27d   :  { %v1762_v61 = vadd.f32 %v1761_v38, %v1760_v27 }
 0x27e   :  { %v1621_v49 = vmax.f32 %v1601_v5, 0.0  ;;  %v1604_v9 = vadd.f32 %v2066_v36, %v1507_v18 }
 0x280   :  { %v1733_v50 = vmul.f32 %v1712_v28, %v1621_v49  ;;  %v1622_v23 = vmax.f32 %v1604_v9, 0.0 }
 0x282   :  { %v1763_v4 = vsel %vm1735_vm1, %v1733_v50, 0.0  ;;  %v1734_v59 = vmul.f32 %v1717_v24, %v1622_v23 }
 0x283   :  { %v1764_v52 = vadd.f32 %v1763_v4, %v1762_v61 }
 0x284   :  { %v1765_v7 = vsel %vm1735_vm1, %v1734_v59, 0.0 }
 0x285   :  { %v1766_v11 = vadd.f32 %v1765_v7, %v1764_v52 }
 0x287   :  { %v1767_v33 = vrot.slane %v1766_v11, 4 }
 0x289   :  { %v1768_v56 = vadd.f32 %v1767_v33, %v1766_v11 }
 0x28b   :  { %v1769_v1 = vrot.slane %v1768_v56, 2 }
 0x28d   :  { %v1770_v60 = vadd.f32 %v1769_v1, %v1768_v56 }
 0x28f   :  { %v1771_v47 = vrot.slane %v1770_v60, 1 }
 0x291   :  { %v1772_v17 = vadd.f32 %v1771_v47, %v1770_v60 }
 0x293   :  { %v1783_v13 = vadd.f32 %v1782_v51, %v1772_v17 }
 0x295   :  { %v1784_v26 = vand.u32 2147483647, %v1783_v13  ;;  %vm1791_vm3 = vcmp.ge.f32.partialorder %v1783_v13, 0.0 }
 0x297   :  { %v1785_v40 = vsub.f32 0.0, %v1784_v26 }
 0x299   :  { %v1786_v10 = vmul.f32 1.442695, %v1785_v40 }
 0x29b   :  { %2234 = vpow2.f32 %v1786_v10 }
 0x2a5   :  { %v2235_v42 = vpop.eup %2234 }
 0x2a6   :  { %v1788_v3 = vadd.f32 1.0, %v2235_v42 }
 0x2a8   :  { %2236 = vrcp.f32 %v1788_v3 }
 0x2b2   :  { %v2237_v53 = vpop.eup %2236 }
 0x2b3   :  { %v1792_v45 = vmul.f32 %v2237_v53, %v2235_v42 }
 0x2b5   :  { %v1793_v19 = vsel %vm1791_vm3, %v2237_v53, %v1792_v45 }
 0x2b6   :  { %1795 = vst.msk [vmem:[#allocation3] sm:$0x1] %vm1794_vm2, %v1793_v19 }
 0x2b7   :  { %2249 = shalt.err (!%p2246_p4)
}
 0x2b8   :  { %s2250_s12 = scalar_lea.hbm %s3119_s7, 16 }
 0x2b9   :  { %p2251_p5 = scmp.ne.s32.totalorder %s3119_s7, %s2250_s12  ;;  %p2254_p6 = scmp.lt.u32.totalorder %s2250_s12, %s3119_s7 }
 0x2bb   :  { %p2256_p7 = pnand %p2254_p6, %p2251_p5 }
 0x2bd   :  { %2259 = shalt.err (!%p2256_p7)
}
 0x2be   :  { %1805 = dma.vmem_to_hbm [thread:$0]  %s1803_s9, 16, %s3119_s7, [#allocation4]  }
 0x2bf   :  { %2260 = dma.done.wait [#allocation4], 16  }
 0x2c0   :  { %2261 = vsyncadd [#allocation4], 4294967280 }
 0x2c1   :  { %1809 = vsyncpa [#allocation4], 1 }

</bundles_post_ra>
